<compile_context>
chip_gen: v7x
topology: tpu7x:2x2x1
jax: 0.10.0
libtpu: 0.0.40
codegen_flags: <defaults>
</compile_context>

<pallas_src>
import math
import functools

import jax
import jax.numpy as jnp
from jax import lax
from jax.experimental import pallas as pl
from jax.experimental.pallas import tpu as pltpu

NUM_OUTPUTS = 5


# ---------------------------------------------------------------------------
# Kernel
# ---------------------------------------------------------------------------
def _layernorm(x, gamma, beta, eps=1e-5):
    mu = jnp.mean(x, axis=-1, keepdims=True)
    var = jnp.mean((x - mu) ** 2, axis=-1, keepdims=True)
    return (x - mu) * lax.rsqrt(var + eps) * gamma + beta


def fused_classifier_kernel(ids_ref, emb_ref, pe_ref, wqkv_ref, wo_ref, w1_ref,
                            w2_ref, vec_ref, wh_ref, bh_ref, out_ref,
                            *, B, S, D, H, FF, num_layers, vocab):
    """Entire forward in one kernel; all operands VMEM-resident.

    ids_ref : (B*S, 1) int32      token ids
    emb_ref : (vocab, D)          embedding table
    pe_ref  : (max_len, D)        positional-encoding table
    wqkv_ref: (L, D, 3D)          fused QKV weights, (in, out) orientation
    wo_ref  : (L, D, D)           attention output projection
    w1_ref  : (L, D, FF)          FFN up projection
    w2_ref  : (L, FF, D)          FFN down projection
    vec_ref : (L, 8, max(3D,FF))  packed per-layer vectors:
              rows = [bqkv, bo, b1, b2, ln1_g, ln1_b, ln2_g, ln2_b]
    wh_ref  : (D, NUM_OUTPUTS)    classifier head weight
    bh_ref  : (1, NUM_OUTPUTS)    classifier head bias
    out_ref : (B, NUM_OUTPUTS)    softmax probabilities
    """
    Dh = D // H
    scale = 1.0 / math.sqrt(Dh)
    BS = B * S

    # ---- embedding gather (one-hot matmul on the VMEM-resident table) ----
    ids = ids_ref[...]                                                   # (BS, 1) int32
    onehot = (lax.broadcasted_iota(jnp.int32, (BS, vocab), 1) == ids)
    x = jnp.dot(onehot.astype(jnp.float32), emb_ref[...].astype(jnp.float32),
                preferred_element_type=jnp.float32)                      # (BS, D)
    x = x * math.sqrt(D)

    # ---- positional encoding (reproduces the pe[:batch] batch_first quirk) -
    pos = pe_ref[0:B, :].astype(jnp.float32)                             # (B, D)
    x = (x.reshape(B, S, D) + pos[:, None, :]).reshape(BS, D)

    # ---- encoder stack (static unroll over layers) ------------------------
    for l in range(num_layers):
        wqkv = wqkv_ref[l].astype(jnp.float32)                           # (D, 3D)
        wo = wo_ref[l].astype(jnp.float32)                               # (D, D)
        w1 = w1_ref[l].astype(jnp.float32)                               # (D, FF)
        w2 = w2_ref[l].astype(jnp.float32)                               # (FF, D)
        vec = vec_ref[l].astype(jnp.float32)                             # (8, WVEC)
        bqkv = vec[0:1, 0:3 * D]
        bo = vec[1:2, 0:D]
        b1 = vec[2:3, 0:FF]
        b2 = vec[3:4, 0:D]
        g1 = vec[4:5, 0:D]
        be1 = vec[5:6, 0:D]
        g2 = vec[6:7, 0:D]
        be2 = vec[7:8, 0:D]

        # -- fused QKV projection: one MXU push with 3D output lanes --------
        qkv = jnp.dot(x, wqkv, preferred_element_type=jnp.float32) + bqkv  # (BS, 3D)
        qkv3 = qkv.reshape(B, S, 3 * D)

        # -- multi-head self-attention (static head loop, batched over B) ---
        head_outs = []
        for h in range(H):
            qh = qkv3[:, :, h * Dh:(h + 1) * Dh]                          # (B, S, Dh)
            kh = qkv3[:, :, D + h * Dh:D + (h + 1) * Dh]
            vh = qkv3[:, :, 2 * D + h * Dh:2 * D + (h + 1) * Dh]
            s = jnp.einsum('bqd,bkd->bqk', qh, kh,
                           preferred_element_type=jnp.float32) * scale    # (B, S, S)
            s = s - jnp.max(s, axis=-1, keepdims=True)
            p = jnp.exp(s)
            p = p * pl.reciprocal(jnp.sum(p, axis=-1, keepdims=True), approx=True)
            head_outs.append(jnp.einsum('bqk,bkd->bqd', p, vh,
                                        preferred_element_type=jnp.float32))
        attn = jnp.concatenate(head_outs, axis=-1).reshape(BS, D)         # (BS, D)
        attn = jnp.dot(attn, wo, preferred_element_type=jnp.float32) + bo

        # -- residual + LN1, feed-forward (relu), residual + LN2 ------------
        x = _layernorm(x + attn, g1, be1)
        hff = jnp.maximum(jnp.dot(x, w1, preferred_element_type=jnp.float32) + b1, 0.0)
        ff = jnp.dot(hff, w2, preferred_element_type=jnp.float32) + b2
        x = _layernorm(x + ff, g2, be2)

    # ---- classifier head: mean over seq -> Linear -> softmax (exact) ------
    wh = wh_ref[...].astype(jnp.float32)                                  # (D, NUM_OUTPUTS)
    bh = bh_ref[...].astype(jnp.float32)                                  # (1, NUM_OUTPUTS)
    m = jnp.sum(x.reshape(B, S, D), axis=1) * (1.0 / S)                   # (B, D)
    logits = jnp.dot(m, wh, preferred_element_type=jnp.float32) + bh      # (B, NUM_OUTPUTS)
    logits = logits - jnp.max(logits, axis=-1, keepdims=True)
    p = jnp.exp(logits)
    out_ref[...] = (p / jnp.sum(p, axis=-1, keepdims=True)).astype(out_ref.dtype)


# ---------------------------------------------------------------------------
# Wrapper
# ---------------------------------------------------------------------------
def classifier_forward(input_ids, emb_table, pe_table, wqkv, wo, w1, w2, vec,
                       w_head_t, b_head, *, d_model, num_heads):
    B, S = input_ids.shape
    D = d_model
    FF = w1.shape[-1]
    L = wqkv.shape[0]
    vocab = emb_table.shape[0]

    ids2 = input_ids.reshape(B * S, 1).astype(jnp.int32)   # layout plumbing only

    args = (ids2, emb_table, pe_table, wqkv, wo, w1, w2, vec, w_head_t, b_head)

    def _full_spec(a):
        nd = a.ndim
        return pl.BlockSpec(a.shape, lambda i, nd=nd: (0,) * nd)

    kernel = functools.partial(fused_classifier_kernel,
                               B=B, S=S, D=D, H=num_heads, FF=FF,
                               num_layers=L, vocab=vocab)

    # Single fused step; everything VMEM-resident (well under the 16/32 MiB
    # scoped default on v5e/v6e/v7x).  If batch is ever scaled up, add a
    # leading 'parallel' batch grid axis (v7x: 2 TensorCores) and re-check the
    # 64 MiB/TC VMEM budget.
    return pl.pallas_call(
        kernel,
        out_shape=jax.ShapeDtypeStruct((B, NUM_OUTPUTS), jnp.float32),
        grid=(1,),
        in_specs=[_full_spec(a) for a in args],
        out_specs=pl.BlockSpec((B, NUM_OUTPUTS), lambda i: (0, 0)),
        compiler_params=pltpu.CompilerParams(dimension_semantics=("arbitrary",)),
    )(*args)


# ---------------------------------------------------------------------------
# Parameter construction (PyTorch layout) + host-side packing
# ---------------------------------------------------------------------------
def make_positional_encoding(max_len, d_model):
    position = jnp.arange(max_len, dtype=jnp.float32)[:, None]
    div_term = jnp.exp(jnp.arange(0, d_model, 2, dtype=jnp.float32)
                       * (-math.log(10000.0) / d_model))
    pe = jnp.zeros((max_len, d_model), jnp.float32)
    pe = pe.at[:, 0::2].set(jnp.sin(position * div_term))
    pe = pe.at[:, 1::2].set(jnp.cos(position * div_term))
    return pe                                                       # (max_len, D)


def init_encoder_layer(key, d_model, ff_dim):
    """Parameters in PyTorch TransformerEncoderLayer orientation."""
    ks = jax.random.split(key, 8)
    sc = 0.02
    return dict(
        in_proj_w=jax.random.normal(ks[0], (3 * d_model, d_model), jnp.float32) * sc,
        in_proj_b=jax.random.normal(ks[1], (3 * d_model,), jnp.float32) * sc,
        out_w=jax.random.normal(ks[2], (d_model, d_model), jnp.float32) * sc,
        out_b=jax.random.normal(ks[3], (d_model,), jnp.float32) * sc,
        lin1_w=jax.random.normal(ks[4], (ff_dim, d_model), jnp.float32) * sc,
        lin1_b=jax.random.normal(ks[5], (ff_dim,), jnp.float32) * sc,
        lin2_w=jax.random.normal(ks[6], (d_model, ff_dim), jnp.float32) * sc,
        lin2_b=jax.random.normal(ks[7], (d_model,), jnp.float32) * sc,
        ln1_w=jnp.ones((d_model,), jnp.float32),
        ln1_b=jnp.zeros((d_model,), jnp.float32),
        ln2_w=jnp.ones((d_model,), jnp.float32),
        ln2_b=jnp.zeros((d_model,), jnp.float32),
    )


def pack_layer_params(layers, d_model, ff_dim):
    """Transpose to (in, out) and stack all layers; pack the 8 per-layer vectors."""
    wvec = max(3 * d_model, ff_dim, d_model)

    def pad(v):
        return jnp.pad(v, (0, wvec - v.shape[0]))

    wqkv = jnp.stack([p['in_proj_w'].T for p in layers])            # (L, D, 3D)
    wo = jnp.stack([p['out_w'].T for p in layers])                  # (L, D, D)
    w1 = jnp.stack([p['lin1_w'].T for p in layers])                 # (L, D, FF)
    w2 = jnp.stack([p['lin2_w'].T for p in layers])                 # (L, FF, D)
    vec = jnp.stack([jnp.stack([pad(p['in_proj_b']), pad(p['out_b']),
                                pad(p['lin1_b']), pad(p['lin2_b']),
                                pad(p['ln1_w']), pad(p['ln1_b']),
                                pad(p['ln2_w']), pad(p['ln2_b'])])
                     for p in layers])                              # (L, 8, wvec)
    return wqkv, wo, w1, w2, vec


# ---------------------------------------------------------------------------
# Pure-JAX reference (mirrors the PyTorch module, incl. the PE quirk)
# ---------------------------------------------------------------------------
def _ref_layernorm(x, w, b, eps=1e-5):
    mu = jnp.mean(x, -1, keepdims=True)
    var = jnp.mean((x - mu) ** 2, -1, keepdims=True)
    return (x - mu) / jnp.sqrt(var + eps) * w + b


def reference_forward(input_ids, emb_table, pe_table, layers, w_head, b_head,
                      d_model, num_heads):
    B, S = input_ids.shape
    D, H = d_model, num_heads
    Dh = D // H
    x = emb_table[input_ids] * math.sqrt(D)                         # (B, S, D)
    x = x + pe_table[:B][:, None, :]                                # pe[:batch] quirk
    for p in layers:
        qkv = x @ p['in_proj_w'].T + p['in_proj_b']
        q, k, v = jnp.split(qkv, 3, axis=-1)
        q = q.reshape(B, S, H, Dh).transpose(0, 2, 1, 3)
        k = k.reshape(B, S, H, Dh).transpose(0, 2, 1, 3)
        v = v.reshape(B, S, H, Dh).transpose(0, 2, 1, 3)
        s = jnp.einsum('bhqd,bhkd->bhqk', q, k) / math.sqrt(Dh)
        a = jax.nn.softmax(s, axis=-1)
        o = jnp.einsum('bhqk,bhkd->bhqd', a, v).transpose(0, 2, 1, 3).reshape(B, S, D)
        attn = o @ p['out_w'].T + p['out_b']
        x = _ref_layernorm(x + attn, p['ln1_w'], p['ln1_b'])
        hff = jax.nn.relu(x @ p['lin1_w'].T + p['lin1_b'])
        ffn = hff @ p['lin2_w'].T + p['lin2_b']
        x = _ref_layernorm(x + ffn, p['ln2_w'], p['ln2_b'])
    m = jnp.mean(x, axis=1)
    logits = m @ w_head.T + b_head
    return jax.nn.softmax(logits, axis=-1)


# ---------------------------------------------------------------------------
if __name__ == "__main__":
    # Small shapes consistent with the module's structure.
    VOCAB = 1024
    D_MODEL = 32
    NUM_HEADS = 4
    FF_DIM = 64
    ENC_STACK = 2
    BATCH, SEQ = 2, 8
    MAX_LEN = 16

    key = jax.random.PRNGKey(0)
    k_emb, k_ids, k_head, k_hb, k_layers = jax.random.split(key, 5)

    emb_table = jax.random.normal(k_emb, (VOCAB, D_MODEL), jnp.float32) * 0.02
    pe_table = make_positional_encoding(MAX_LEN, D_MODEL)
    layer_keys = jax.random.split(k_layers, ENC_STACK)
    layers = [init_encoder_layer(lk, D_MODEL, FF_DIM) for lk in layer_keys]
    w_head = jax.random.normal(k_head, (NUM_OUTPUTS, D_MODEL), jnp.float32) * 0.02
    b_head = jax.random.normal(k_hb, (NUM_OUTPUTS,), jnp.float32) * 0.02

    # One-time host packing (outside the jitted forward).
    wqkv, wo, w1, w2, vec = pack_layer_params(layers, D_MODEL, FF_DIM)
    w_head_t = w_head.T                                             # (D, 5)
    b_head2 = b_head.reshape(1, NUM_OUTPUTS)

    input_ids = jax.random.randint(k_ids, (BATCH, SEQ), 0, VOCAB, dtype=jnp.int32)

    fwd = jax.jit(functools.partial(classifier_forward,
                                    d_model=D_MODEL, num_heads=NUM_HEADS))
    out = fwd(input_ids, emb_table, pe_table, wqkv, wo, w1, w2, vec,
              w_head_t, b_head2)
    out = jax.block_until_ready(out)
    assert out.shape == (BATCH, NUM_OUTPUTS)

    ref = reference_forward(input_ids, emb_table, pe_table, layers, w_head, b_head,
                            D_MODEL, NUM_HEADS)
    assert jnp.allclose(out, ref, rtol=2e-2, atol=2e-3), (out, ref)

    print("KERNEL_OK")
</pallas_src>

<mosaic_0001>
module attributes {stable_mosaic.version = 11 : i64} {
  func.func @fused_classifier_kernel(%arg0: i32, %arg1: memref<16x1xi32, #tpu.memory_space<vmem>>, %arg2: memref<1024x32xf32, #tpu.memory_space<vmem>>, %arg3: memref<16x32xf32, #tpu.memory_space<vmem>>, %arg4: memref<2x32x96xf32, #tpu.memory_space<vmem>>, %arg5: memref<2x32x32xf32, #tpu.memory_space<vmem>>, %arg6: memref<2x32x64xf32, #tpu.memory_space<vmem>>, %arg7: memref<2x64x32xf32, #tpu.memory_space<vmem>>, %arg8: memref<2x8x96xf32, #tpu.memory_space<vmem>>, %arg9: memref<32x5xf32, #tpu.memory_space<vmem>>, %arg10: memref<1x5xf32, #tpu.memory_space<vmem>>, %arg11: memref<2x5xf32, #tpu.memory_space<vmem>>) attributes {dimension_semantics = [#tpu.dimension_semantics<arbitrary>], iteration_bounds = array<i64: 1>, scalar_prefetch = 0 : i64, scratch_operands = 0 : i64, tpu.core_type = #tpu.core_type<tc>, window_params = [{pipeline_mode = #tpu.pipeline_mode<synchronous>, transform_indices = @transform_0, window_bounds = array<i64: 16, 1>}, {pipeline_mode = #tpu.pipeline_mode<synchronous>, transform_indices = @transform_1, window_bounds = array<i64: 1024, 32>}, {pipeline_mode = #tpu.pipeline_mode<synchronous>, transform_indices = @transform_2, window_bounds = array<i64: 16, 32>}, {pipeline_mode = #tpu.pipeline_mode<synchronous>, transform_indices = @transform_3, window_bounds = array<i64: 2, 32, 96>}, {pipeline_mode = #tpu.pipeline_mode<synchronous>, transform_indices = @transform_4, window_bounds = array<i64: 2, 32, 32>}, {pipeline_mode = #tpu.pipeline_mode<synchronous>, transform_indices = @transform_5, window_bounds = array<i64: 2, 32, 64>}, {pipeline_mode = #tpu.pipeline_mode<synchronous>, transform_indices = @transform_6, window_bounds = array<i64: 2, 64, 32>}, {pipeline_mode = #tpu.pipeline_mode<synchronous>, transform_indices = @transform_7, window_bounds = array<i64: 2, 8, 96>}, {pipeline_mode = #tpu.pipeline_mode<synchronous>, transform_indices = @transform_8, window_bounds = array<i64: 32, 5>}, {pipeline_mode = #tpu.pipeline_mode<synchronous>, transform_indices = @transform_9, window_bounds = array<i64: 1, 5>}, {pipeline_mode = #tpu.pipeline_mode<synchronous>, transform_indices = @transform_10, window_bounds = array<i64: 2, 5>}]} {
    %c0 = arith.constant 0 : index
    %c0_0 = arith.constant 0 : index
    %0 = vector.load %arg1[%c0, %c0_0] : memref<16x1xi32, #tpu.memory_space<vmem>>, vector<16x1xi32>
    %1 = tpu.iota {dimensions = array<i32: 1>} : vector<16x1024xi32>
    %2 = vector.broadcast %0 : vector<16x1xi32> to vector<16x1024xi32>
    %3 = arith.cmpi eq, %1, %2 : vector<16x1024xi32>
    %4 = arith.extui %3 : vector<16x1024xi1> to vector<16x1024xi32>
    %5 = arith.sitofp %4 : vector<16x1024xi32> to vector<16x1024xf32>
    %c0_1 = arith.constant 0 : index
    %c0_2 = arith.constant 0 : index
    %6 = vector.load %arg2[%c0_1, %c0_2] : memref<1024x32xf32, #tpu.memory_space<vmem>>, vector<1024x32xf32>
    %cst = arith.constant dense<0.000000e+00> : vector<16x32xf32>
    %7 = tpu.matmul %5, %6, %cst {dimension_numbers = #tpu.dot_dimension_numbers<[1], [0], [0], [1], [0, 0, 1, 1], [], []>} : vector<16x1024xf32>, vector<1024x32xf32>, vector<16x32xf32> -> vector<16x32xf32>
    %cst_3 = arith.constant 5.65685415 : f32
    %8 = vector.broadcast %cst_3 : f32 to vector<16x32xf32>
    %9 = arith.mulf %7, %8 : vector<16x32xf32>
    %c0_4 = arith.constant 0 : index
    %c0_5 = arith.constant 0 : index
    %10 = vector.load %arg3[%c0_4, %c0_5] : memref<16x32xf32, #tpu.memory_space<vmem>>, vector<2x32xf32>
    %11 = vector.shape_cast %9 : vector<16x32xf32> to vector<2x8x32xf32>
    %12 = vector.shape_cast %10 : vector<2x32xf32> to vector<2x1x32xf32>
    %13 = vector.broadcast %12 : vector<2x1x32xf32> to vector<2x8x32xf32>
    %14 = arith.addf %11, %13 : vector<2x8x32xf32>
    %15 = vector.shape_cast %14 : vector<2x8x32xf32> to vector<16x32xf32>
    %c0_6 = arith.constant 0 : index
    %c0_7 = arith.constant 0 : index
    %c0_8 = arith.constant 0 : index
    %16 = vector.load %arg4[%c0_6, %c0_7, %c0_8] : memref<2x32x96xf32, #tpu.memory_space<vmem>>, vector<1x32x96xf32>
    %17 = vector.shape_cast %16 : vector<1x32x96xf32> to vector<32x96xf32>
    %c0_9 = arith.constant 0 : index
    %c0_10 = arith.constant 0 : index
    %c0_11 = arith.constant 0 : index
    %18 = vector.load %arg5[%c0_9, %c0_10, %c0_11] : memref<2x32x32xf32, #tpu.memory_space<vmem>>, vector<1x32x32xf32>
    %19 = vector.shape_cast %18 : vector<1x32x32xf32> to vector<32x32xf32>
    %c0_12 = arith.constant 0 : index
    %c0_13 = arith.constant 0 : index
    %c0_14 = arith.constant 0 : index
    %20 = vector.load %arg6[%c0_12, %c0_13, %c0_14] : memref<2x32x64xf32, #tpu.memory_space<vmem>>, vector<1x32x64xf32>
    %21 = vector.shape_cast %20 : vector<1x32x64xf32> to vector<32x64xf32>
    %c0_15 = arith.constant 0 : index
    %c0_16 = arith.constant 0 : index
    %c0_17 = arith.constant 0 : index
    %22 = vector.load %arg7[%c0_15, %c0_16, %c0_17] : memref<2x64x32xf32, #tpu.memory_space<vmem>>, vector<1x64x32xf32>
    %23 = vector.shape_cast %22 : vector<1x64x32xf32> to vector<64x32xf32>
    %c0_18 = arith.constant 0 : index
    %c0_19 = arith.constant 0 : index
    %c0_20 = arith.constant 0 : index
    %24 = vector.load %arg8[%c0_18, %c0_19, %c0_20] : memref<2x8x96xf32, #tpu.memory_space<vmem>>, vector<1x8x96xf32>
    %25 = vector.shape_cast %24 : vector<1x8x96xf32> to vector<8x96xf32>
    %26 = vector.extract_strided_slice %25 {offsets = [0, 0], sizes = [1, 96], strides = [1, 1]} : vector<8x96xf32> to vector<1x96xf32>
    %27 = vector.extract_strided_slice %25 {offsets = [1, 0], sizes = [1, 32], strides = [1, 1]} : vector<8x96xf32> to vector<1x32xf32>
    %28 = vector.extract_strided_slice %25 {offsets = [2, 0], sizes = [1, 64], strides = [1, 1]} : vector<8x96xf32> to vector<1x64xf32>
    %29 = vector.extract_strided_slice %25 {offsets = [3, 0], sizes = [1, 32], strides = [1, 1]} : vector<8x96xf32> to vector<1x32xf32>
    %30 = vector.extract_strided_slice %25 {offsets = [4, 0], sizes = [1, 32], strides = [1, 1]} : vector<8x96xf32> to vector<1x32xf32>
    %31 = vector.extract_strided_slice %25 {offsets = [5, 0], sizes = [1, 32], strides = [1, 1]} : vector<8x96xf32> to vector<1x32xf32>
    %32 = vector.extract_strided_slice %25 {offsets = [6, 0], sizes = [1, 32], strides = [1, 1]} : vector<8x96xf32> to vector<1x32xf32>
    %33 = vector.extract_strided_slice %25 {offsets = [7, 0], sizes = [1, 32], strides = [1, 1]} : vector<8x96xf32> to vector<1x32xf32>
    %cst_21 = arith.constant dense<0.000000e+00> : vector<16x96xf32>
    %34 = tpu.matmul %15, %17, %cst_21 {dimension_numbers = #tpu.dot_dimension_numbers<[1], [0], [0], [1], [0, 0, 1, 1], [], []>} : vector<16x32xf32>, vector<32x96xf32>, vector<16x96xf32> -> vector<16x96xf32>
    %35 = vector.broadcast %26 : vector<1x96xf32> to vector<16x96xf32>
    %36 = arith.addf %34, %35 : vector<16x96xf32>
    %37 = vector.shape_cast %36 : vector<16x96xf32> to vector<2x8x96xf32>
    %38 = vector.extract_strided_slice %37 {offsets = [0, 0, 0], sizes = [2, 8, 8], strides = [1, 1, 1]} : vector<2x8x96xf32> to vector<2x8x8xf32>
    %39 = vector.extract_strided_slice %37 {offsets = [0, 0, 32], sizes = [2, 8, 8], strides = [1, 1, 1]} : vector<2x8x96xf32> to vector<2x8x8xf32>
    %40 = vector.extract_strided_slice %37 {offsets = [0, 0, 64], sizes = [2, 8, 8], strides = [1, 1, 1]} : vector<2x8x96xf32> to vector<2x8x8xf32>
    "tpu.trace_start"() <{level = 10 : i32, message = "bqd,bkd->bqk"}> : () -> ()
    %cst_22 = arith.constant dense<0.000000e+00> : vector<2x8x8xf32>
    %41 = tpu.matmul %38, %39, %cst_22 {dimension_numbers = #tpu.dot_dimension_numbers<[2], [2], [1], [1], [0, 0, 0, 1, 1, 1], [0], [0]>} : vector<2x8x8xf32>, vector<2x8x8xf32>, vector<2x8x8xf32> -> vector<2x8x8xf32>
    "tpu.trace_stop"() : () -> ()
    %cst_23 = arith.constant 0.353553385 : f32
    %42 = vector.broadcast %cst_23 : f32 to vector<2x8x8xf32>
    %43 = arith.mulf %41, %42 : vector<2x8x8xf32>
    %cst_24 = arith.constant dense<0xFF800000> : vector<2x8xf32>
    %44 = vector.multi_reduction <maximumf>, %43, %cst_24 [2] : vector<2x8x8xf32> to vector<2x8xf32>
    %45 = vector.shape_cast %44 : vector<2x8xf32> to vector<2x8x1xf32>
    %46 = vector.broadcast %45 : vector<2x8x1xf32> to vector<2x8x8xf32>
    %47 = arith.subf %43, %46 : vector<2x8x8xf32>
    %48 = math.exp %47 : vector<2x8x8xf32>
    %cst_25 = arith.constant dense<0.000000e+00> : vector<2x8xf32>
    %49 = vector.multi_reduction <add>, %48, %cst_25 [2] : vector<2x8x8xf32> to vector<2x8xf32>
    %50 = vector.shape_cast %49 : vector<2x8xf32> to vector<2x8x1xf32>
    %51 = tpu.reciprocal %50 {approx = true} : vector<2x8x1xf32> -> vector<2x8x1xf32>
    %52 = vector.broadcast %51 : vector<2x8x1xf32> to vector<2x8x8xf32>
    %53 = arith.mulf %48, %52 : vector<2x8x8xf32>
    "tpu.trace_start"() <{level = 10 : i32, message = "bqk,bkd->bqd"}> : () -> ()
    %cst_26 = arith.constant dense<0.000000e+00> : vector<2x8x8xf32>
    %54 = tpu.matmul %53, %40, %cst_26 {dimension_numbers = #tpu.dot_dimension_numbers<[2], [1], [1], [2], [0, 0, 0, 1, 1, 2], [0], [0]>} : vector<2x8x8xf32>, vector<2x8x8xf32>, vector<2x8x8xf32> -> vector<2x8x8xf32>
    "tpu.trace_stop"() : () -> ()
    %55 = vector.extract_strided_slice %37 {offsets = [0, 0, 8], sizes = [2, 8, 8], strides = [1, 1, 1]} : vector<2x8x96xf32> to vector<2x8x8xf32>
    %56 = vector.extract_strided_slice %37 {offsets = [0, 0, 40], sizes = [2, 8, 8], strides = [1, 1, 1]} : vector<2x8x96xf32> to vector<2x8x8xf32>
    %57 = vector.extract_strided_slice %37 {offsets = [0, 0, 72], sizes = [2, 8, 8], strides = [1, 1, 1]} : vector<2x8x96xf32> to vector<2x8x8xf32>
    "tpu.trace_start"() <{level = 10 : i32, message = "bqd,bkd->bqk"}> : () -> ()
    %cst_27 = arith.constant dense<0.000000e+00> : vector<2x8x8xf32>
    %58 = tpu.matmul %55, %56, %cst_27 {dimension_numbers = #tpu.dot_dimension_numbers<[2], [2], [1], [1], [0, 0, 0, 1, 1, 1], [0], [0]>} : vector<2x8x8xf32>, vector<2x8x8xf32>, vector<2x8x8xf32> -> vector<2x8x8xf32>
    "tpu.trace_stop"() : () -> ()
    %cst_28 = arith.constant 0.353553385 : f32
    %59 = vector.broadcast %cst_28 : f32 to vector<2x8x8xf32>
    %60 = arith.mulf %58, %59 : vector<2x8x8xf32>
    %cst_29 = arith.constant dense<0xFF800000> : vector<2x8xf32>
    %61 = vector.multi_reduction <maximumf>, %60, %cst_29 [2] : vector<2x8x8xf32> to vector<2x8xf32>
    %62 = vector.shape_cast %61 : vector<2x8xf32> to vector<2x8x1xf32>
    %63 = vector.broadcast %62 : vector<2x8x1xf32> to vector<2x8x8xf32>
    %64 = arith.subf %60, %63 : vector<2x8x8xf32>
    %65 = math.exp %64 : vector<2x8x8xf32>
    %cst_30 = arith.constant dense<0.000000e+00> : vector<2x8xf32>
    %66 = vector.multi_reduction <add>, %65, %cst_30 [2] : vector<2x8x8xf32> to vector<2x8xf32>
    %67 = vector.shape_cast %66 : vector<2x8xf32> to vector<2x8x1xf32>
    %68 = tpu.reciprocal %67 {approx = true} : vector<2x8x1xf32> -> vector<2x8x1xf32>
    %69 = vector.broadcast %68 : vector<2x8x1xf32> to vector<2x8x8xf32>
    %70 = arith.mulf %65, %69 : vector<2x8x8xf32>
    "tpu.trace_start"() <{level = 10 : i32, message = "bqk,bkd->bqd"}> : () -> ()
    %cst_31 = arith.constant dense<0.000000e+00> : vector<2x8x8xf32>
    %71 = tpu.matmul %70, %57, %cst_31 {dimension_numbers = #tpu.dot_dimension_numbers<[2], [1], [1], [2], [0, 0, 0, 1, 1, 2], [0], [0]>} : vector<2x8x8xf32>, vector<2x8x8xf32>, vector<2x8x8xf32> -> vector<2x8x8xf32>
    "tpu.trace_stop"() : () -> ()
    %72 = vector.extract_strided_slice %37 {offsets = [0, 0, 16], sizes = [2, 8, 8], strides = [1, 1, 1]} : vector<2x8x96xf32> to vector<2x8x8xf32>
    %73 = vector.extract_strided_slice %37 {offsets = [0, 0, 48], sizes = [2, 8, 8], strides = [1, 1, 1]} : vector<2x8x96xf32> to vector<2x8x8xf32>
    %74 = vector.extract_strided_slice %37 {offsets = [0, 0, 80], sizes = [2, 8, 8], strides = [1, 1, 1]} : vector<2x8x96xf32> to vector<2x8x8xf32>
    "tpu.trace_start"() <{level = 10 : i32, message = "bqd,bkd->bqk"}> : () -> ()
    %cst_32 = arith.constant dense<0.000000e+00> : vector<2x8x8xf32>
    %75 = tpu.matmul %72, %73, %cst_32 {dimension_numbers = #tpu.dot_dimension_numbers<[2], [2], [1], [1], [0, 0, 0, 1, 1, 1], [0], [0]>} : vector<2x8x8xf32>, vector<2x8x8xf32>, vector<2x8x8xf32> -> vector<2x8x8xf32>
    "tpu.trace_stop"() : () -> ()
    %cst_33 = arith.constant 0.353553385 : f32
    %76 = vector.broadcast %cst_33 : f32 to vector<2x8x8xf32>
    %77 = arith.mulf %75, %76 : vector<2x8x8xf32>
    %cst_34 = arith.constant dense<0xFF800000> : vector<2x8xf32>
    %78 = vector.multi_reduction <maximumf>, %77, %cst_34 [2] : vector<2x8x8xf32> to vector<2x8xf32>
    %79 = vector.shape_cast %78 : vector<2x8xf32> to vector<2x8x1xf32>
    %80 = vector.broadcast %79 : vector<2x8x1xf32> to vector<2x8x8xf32>
    %81 = arith.subf %77, %80 : vector<2x8x8xf32>
    %82 = math.exp %81 : vector<2x8x8xf32>
    %cst_35 = arith.constant dense<0.000000e+00> : vector<2x8xf32>
    %83 = vector.multi_reduction <add>, %82, %cst_35 [2] : vector<2x8x8xf32> to vector<2x8xf32>
    %84 = vector.shape_cast %83 : vector<2x8xf32> to vector<2x8x1xf32>
    %85 = tpu.reciprocal %84 {approx = true} : vector<2x8x1xf32> -> vector<2x8x1xf32>
    %86 = vector.broadcast %85 : vector<2x8x1xf32> to vector<2x8x8xf32>
    %87 = arith.mulf %82, %86 : vector<2x8x8xf32>
    "tpu.trace_start"() <{level = 10 : i32, message = "bqk,bkd->bqd"}> : () -> ()
    %cst_36 = arith.constant dense<0.000000e+00> : vector<2x8x8xf32>
    %88 = tpu.matmul %87, %74, %cst_36 {dimension_numbers = #tpu.dot_dimension_numbers<[2], [1], [1], [2], [0, 0, 0, 1, 1, 2], [0], [0]>} : vector<2x8x8xf32>, vector<2x8x8xf32>, vector<2x8x8xf32> -> vector<2x8x8xf32>
    "tpu.trace_stop"() : () -> ()
    %89 = vector.extract_strided_slice %37 {offsets = [0, 0, 24], sizes = [2, 8, 8], strides = [1, 1, 1]} : vector<2x8x96xf32> to vector<2x8x8xf32>
    %90 = vector.extract_strided_slice %37 {offsets = [0, 0, 56], sizes = [2, 8, 8], strides = [1, 1, 1]} : vector<2x8x96xf32> to vector<2x8x8xf32>
    %91 = vector.extract_strided_slice %37 {offsets = [0, 0, 88], sizes = [2, 8, 8], strides = [1, 1, 1]} : vector<2x8x96xf32> to vector<2x8x8xf32>
    "tpu.trace_start"() <{level = 10 : i32, message = "bqd,bkd->bqk"}> : () -> ()
    %cst_37 = arith.constant dense<0.000000e+00> : vector<2x8x8xf32>
    %92 = tpu.matmul %89, %90, %cst_37 {dimension_numbers = #tpu.dot_dimension_numbers<[2], [2], [1], [1], [0, 0, 0, 1, 1, 1], [0], [0]>} : vector<2x8x8xf32>, vector<2x8x8xf32>, vector<2x8x8xf32> -> vector<2x8x8xf32>
    "tpu.trace_stop"() : () -> ()
    %cst_38 = arith.constant 0.353553385 : f32
    %93 = vector.broadcast %cst_38 : f32 to vector<2x8x8xf32>
    %94 = arith.mulf %92, %93 : vector<2x8x8xf32>
    %cst_39 = arith.constant dense<0xFF800000> : vector<2x8xf32>
    %95 = vector.multi_reduction <maximumf>, %94, %cst_39 [2] : vector<2x8x8xf32> to vector<2x8xf32>
    %96 = vector.shape_cast %95 : vector<2x8xf32> to vector<2x8x1xf32>
    %97 = vector.broadcast %96 : vector<2x8x1xf32> to vector<2x8x8xf32>
    %98 = arith.subf %94, %97 : vector<2x8x8xf32>
    %99 = math.exp %98 : vector<2x8x8xf32>
    %cst_40 = arith.constant dense<0.000000e+00> : vector<2x8xf32>
    %100 = vector.multi_reduction <add>, %99, %cst_40 [2] : vector<2x8x8xf32> to vector<2x8xf32>
    %101 = vector.shape_cast %100 : vector<2x8xf32> to vector<2x8x1xf32>
    %102 = tpu.reciprocal %101 {approx = true} : vector<2x8x1xf32> -> vector<2x8x1xf32>
    %103 = vector.broadcast %102 : vector<2x8x1xf32> to vector<2x8x8xf32>
    %104 = arith.mulf %99, %103 : vector<2x8x8xf32>
    "tpu.trace_start"() <{level = 10 : i32, message = "bqk,bkd->bqd"}> : () -> ()
    %cst_41 = arith.constant dense<0.000000e+00> : vector<2x8x8xf32>
    %105 = tpu.matmul %104, %91, %cst_41 {dimension_numbers = #tpu.dot_dimension_numbers<[2], [1], [1], [2], [0, 0, 0, 1, 1, 2], [0], [0]>} : vector<2x8x8xf32>, vector<2x8x8xf32>, vector<2x8x8xf32> -> vector<2x8x8xf32>
    "tpu.trace_stop"() : () -> ()
    %106 = tpu.concatenate %54, %71, %88, %105 in 2 : vector<2x8x8xf32>, vector<2x8x8xf32>, vector<2x8x8xf32>, vector<2x8x8xf32> -> vector<2x8x32xf32>
    %107 = vector.shape_cast %106 : vector<2x8x32xf32> to vector<16x32xf32>
    %cst_42 = arith.constant dense<0.000000e+00> : vector<16x32xf32>
    %108 = tpu.matmul %107, %19, %cst_42 {dimension_numbers = #tpu.dot_dimension_numbers<[1], [0], [0], [1], [0, 0, 1, 1], [], []>} : vector<16x32xf32>, vector<32x32xf32>, vector<16x32xf32> -> vector<16x32xf32>
    %109 = vector.broadcast %27 : vector<1x32xf32> to vector<16x32xf32>
    %110 = arith.addf %108, %109 : vector<16x32xf32>
    %111 = arith.addf %15, %110 : vector<16x32xf32>
    %cst_43 = arith.constant dense<0.000000e+00> : vector<16xf32>
    %112 = vector.multi_reduction <add>, %111, %cst_43 [1] : vector<16x32xf32> to vector<16xf32>
    %113 = vector.shape_cast %112 : vector<16xf32> to vector<16x1xf32>
    %cst_44 = arith.constant 3.200000e+01 : f32
    %114 = vector.broadcast %cst_44 : f32 to vector<16x1xf32>
    %115 = arith.divf %113, %114 : vector<16x1xf32>
    %116 = vector.broadcast %115 : vector<16x1xf32> to vector<16x32xf32>
    %117 = arith.subf %111, %116 : vector<16x32xf32>
    %118 = arith.mulf %117, %117 : vector<16x32xf32>
    %cst_45 = arith.constant dense<0.000000e+00> : vector<16xf32>
    %119 = vector.multi_reduction <add>, %118, %cst_45 [1] : vector<16x32xf32> to vector<16xf32>
    %120 = vector.shape_cast %119 : vector<16xf32> to vector<16x1xf32>
    %cst_46 = arith.constant 3.200000e+01 : f32
    %121 = vector.broadcast %cst_46 : f32 to vector<16x1xf32>
    %122 = arith.divf %120, %121 : vector<16x1xf32>
    %123 = vector.broadcast %115 : vector<16x1xf32> to vector<16x32xf32>
    %124 = arith.subf %111, %123 : vector<16x32xf32>
    %cst_47 = arith.constant 9.99999974E-6 : f32
    %125 = vector.broadcast %cst_47 : f32 to vector<16x1xf32>
    %126 = arith.addf %122, %125 : vector<16x1xf32>
    %127 = math.rsqrt %126 : vector<16x1xf32>
    %128 = vector.broadcast %127 : vector<16x1xf32> to vector<16x32xf32>
    %129 = arith.mulf %124, %128 : vector<16x32xf32>
    %130 = vector.broadcast %30 : vector<1x32xf32> to vector<16x32xf32>
    %131 = arith.mulf %129, %130 : vector<16x32xf32>
    %132 = vector.broadcast %31 : vector<1x32xf32> to vector<16x32xf32>
    %133 = arith.addf %131, %132 : vector<16x32xf32>
    %cst_48 = arith.constant dense<0.000000e+00> : vector<16x64xf32>
    %134 = tpu.matmul %133, %21, %cst_48 {dimension_numbers = #tpu.dot_dimension_numbers<[1], [0], [0], [1], [0, 0, 1, 1], [], []>} : vector<16x32xf32>, vector<32x64xf32>, vector<16x64xf32> -> vector<16x64xf32>
    %135 = vector.broadcast %28 : vector<1x64xf32> to vector<16x64xf32>
    %136 = arith.addf %134, %135 : vector<16x64xf32>
    %cst_49 = arith.constant 0.000000e+00 : f32
    %137 = vector.broadcast %cst_49 : f32 to vector<16x64xf32>
    %138 = arith.maximumf %136, %137 : vector<16x64xf32>
    %cst_50 = arith.constant dense<0.000000e+00> : vector<16x32xf32>
    %139 = tpu.matmul %138, %23, %cst_50 {dimension_numbers = #tpu.dot_dimension_numbers<[1], [0], [0], [1], [0, 0, 1, 1], [], []>} : vector<16x64xf32>, vector<64x32xf32>, vector<16x32xf32> -> vector<16x32xf32>
    %140 = vector.broadcast %29 : vector<1x32xf32> to vector<16x32xf32>
    %141 = arith.addf %139, %140 : vector<16x32xf32>
    %142 = arith.addf %133, %141 : vector<16x32xf32>
    %cst_51 = arith.constant dense<0.000000e+00> : vector<16xf32>
    %143 = vector.multi_reduction <add>, %142, %cst_51 [1] : vector<16x32xf32> to vector<16xf32>
    %144 = vector.shape_cast %143 : vector<16xf32> to vector<16x1xf32>
    %cst_52 = arith.constant 3.200000e+01 : f32
    %145 = vector.broadcast %cst_52 : f32 to vector<16x1xf32>
    %146 = arith.divf %144, %145 : vector<16x1xf32>
    %147 = vector.broadcast %146 : vector<16x1xf32> to vector<16x32xf32>
    %148 = arith.subf %142, %147 : vector<16x32xf32>
    %149 = arith.mulf %148, %148 : vector<16x32xf32>
    %cst_53 = arith.constant dense<0.000000e+00> : vector<16xf32>
    %150 = vector.multi_reduction <add>, %149, %cst_53 [1] : vector<16x32xf32> to vector<16xf32>
    %151 = vector.shape_cast %150 : vector<16xf32> to vector<16x1xf32>
    %cst_54 = arith.constant 3.200000e+01 : f32
    %152 = vector.broadcast %cst_54 : f32 to vector<16x1xf32>
    %153 = arith.divf %151, %152 : vector<16x1xf32>
    %154 = vector.broadcast %146 : vector<16x1xf32> to vector<16x32xf32>
    %155 = arith.subf %142, %154 : vector<16x32xf32>
    %cst_55 = arith.constant 9.99999974E-6 : f32
    %156 = vector.broadcast %cst_55 : f32 to vector<16x1xf32>
    %157 = arith.addf %153, %156 : vector<16x1xf32>
    %158 = math.rsqrt %157 : vector<16x1xf32>
    %159 = vector.broadcast %158 : vector<16x1xf32> to vector<16x32xf32>
    %160 = arith.mulf %155, %159 : vector<16x32xf32>
    %161 = vector.broadcast %32 : vector<1x32xf32> to vector<16x32xf32>
    %162 = arith.mulf %160, %161 : vector<16x32xf32>
    %163 = vector.broadcast %33 : vector<1x32xf32> to vector<16x32xf32>
    %164 = arith.addf %162, %163 : vector<16x32xf32>
    %c1 = arith.constant 1 : index
    %c0_56 = arith.constant 0 : index
    %c0_57 = arith.constant 0 : index
    %165 = vector.load %arg4[%c1, %c0_56, %c0_57] : memref<2x32x96xf32, #tpu.memory_space<vmem>>, vector<1x32x96xf32>
    %166 = vector.shape_cast %165 : vector<1x32x96xf32> to vector<32x96xf32>
    %c1_58 = arith.constant 1 : index
    %c0_59 = arith.constant 0 : index
    %c0_60 = arith.constant 0 : index
    %167 = vector.load %arg5[%c1_58, %c0_59, %c0_60] : memref<2x32x32xf32, #tpu.memory_space<vmem>>, vector<1x32x32xf32>
    %168 = vector.shape_cast %167 : vector<1x32x32xf32> to vector<32x32xf32>
    %c1_61 = arith.constant 1 : index
    %c0_62 = arith.constant 0 : index
    %c0_63 = arith.constant 0 : index
    %169 = vector.load %arg6[%c1_61, %c0_62, %c0_63] : memref<2x32x64xf32, #tpu.memory_space<vmem>>, vector<1x32x64xf32>
    %170 = vector.shape_cast %169 : vector<1x32x64xf32> to vector<32x64xf32>
    %c1_64 = arith.constant 1 : index
    %c0_65 = arith.constant 0 : index
    %c0_66 = arith.constant 0 : index
    %171 = vector.load %arg7[%c1_64, %c0_65, %c0_66] : memref<2x64x32xf32, #tpu.memory_space<vmem>>, vector<1x64x32xf32>
    %172 = vector.shape_cast %171 : vector<1x64x32xf32> to vector<64x32xf32>
    %c1_67 = arith.constant 1 : index
    %c0_68 = arith.constant 0 : index
    %c0_69 = arith.constant 0 : index
    %173 = vector.load %arg8[%c1_67, %c0_68, %c0_69] : memref<2x8x96xf32, #tpu.memory_space<vmem>>, vector<1x8x96xf32>
    %174 = vector.shape_cast %173 : vector<1x8x96xf32> to vector<8x96xf32>
    %175 = vector.extract_strided_slice %174 {offsets = [0, 0], sizes = [1, 96], strides = [1, 1]} : vector<8x96xf32> to vector<1x96xf32>
    %176 = vector.extract_strided_slice %174 {offsets = [1, 0], sizes = [1, 32], strides = [1, 1]} : vector<8x96xf32> to vector<1x32xf32>
    %177 = vector.extract_strided_slice %174 {offsets = [2, 0], sizes = [1, 64], strides = [1, 1]} : vector<8x96xf32> to vector<1x64xf32>
    %178 = vector.extract_strided_slice %174 {offsets = [3, 0], sizes = [1, 32], strides = [1, 1]} : vector<8x96xf32> to vector<1x32xf32>
    %179 = vector.extract_strided_slice %174 {offsets = [4, 0], sizes = [1, 32], strides = [1, 1]} : vector<8x96xf32> to vector<1x32xf32>
    %180 = vector.extract_strided_slice %174 {offsets = [5, 0], sizes = [1, 32], strides = [1, 1]} : vector<8x96xf32> to vector<1x32xf32>
    %181 = vector.extract_strided_slice %174 {offsets = [6, 0], sizes = [1, 32], strides = [1, 1]} : vector<8x96xf32> to vector<1x32xf32>
    %182 = vector.extract_strided_slice %174 {offsets = [7, 0], sizes = [1, 32], strides = [1, 1]} : vector<8x96xf32> to vector<1x32xf32>
    %cst_70 = arith.constant dense<0.000000e+00> : vector<16x96xf32>
    %183 = tpu.matmul %164, %166, %cst_70 {dimension_numbers = #tpu.dot_dimension_numbers<[1], [0], [0], [1], [0, 0, 1, 1], [], []>} : vector<16x32xf32>, vector<32x96xf32>, vector<16x96xf32> -> vector<16x96xf32>
    %184 = vector.broadcast %175 : vector<1x96xf32> to vector<16x96xf32>
    %185 = arith.addf %183, %184 : vector<16x96xf32>
    %186 = vector.shape_cast %185 : vector<16x96xf32> to vector<2x8x96xf32>
    %187 = vector.extract_strided_slice %186 {offsets = [0, 0, 0], sizes = [2, 8, 8], strides = [1, 1, 1]} : vector<2x8x96xf32> to vector<2x8x8xf32>
    %188 = vector.extract_strided_slice %186 {offsets = [0, 0, 32], sizes = [2, 8, 8], strides = [1, 1, 1]} : vector<2x8x96xf32> to vector<2x8x8xf32>
    %189 = vector.extract_strided_slice %186 {offsets = [0, 0, 64], sizes = [2, 8, 8], strides = [1, 1, 1]} : vector<2x8x96xf32> to vector<2x8x8xf32>
    "tpu.trace_start"() <{level = 10 : i32, message = "bqd,bkd->bqk"}> : () -> ()
    %cst_71 = arith.constant dense<0.000000e+00> : vector<2x8x8xf32>
    %190 = tpu.matmul %187, %188, %cst_71 {dimension_numbers = #tpu.dot_dimension_numbers<[2], [2], [1], [1], [0, 0, 0, 1, 1, 1], [0], [0]>} : vector<2x8x8xf32>, vector<2x8x8xf32>, vector<2x8x8xf32> -> vector<2x8x8xf32>
    "tpu.trace_stop"() : () -> ()
    %cst_72 = arith.constant 0.353553385 : f32
    %191 = vector.broadcast %cst_72 : f32 to vector<2x8x8xf32>
    %192 = arith.mulf %190, %191 : vector<2x8x8xf32>
    %cst_73 = arith.constant dense<0xFF800000> : vector<2x8xf32>
    %193 = vector.multi_reduction <maximumf>, %192, %cst_73 [2] : vector<2x8x8xf32> to vector<2x8xf32>
    %194 = vector.shape_cast %193 : vector<2x8xf32> to vector<2x8x1xf32>
    %195 = vector.broadcast %194 : vector<2x8x1xf32> to vector<2x8x8xf32>
    %196 = arith.subf %192, %195 : vector<2x8x8xf32>
    %197 = math.exp %196 : vector<2x8x8xf32>
    %cst_74 = arith.constant dense<0.000000e+00> : vector<2x8xf32>
    %198 = vector.multi_reduction <add>, %197, %cst_74 [2] : vector<2x8x8xf32> to vector<2x8xf32>
    %199 = vector.shape_cast %198 : vector<2x8xf32> to vector<2x8x1xf32>
    %200 = tpu.reciprocal %199 {approx = true} : vector<2x8x1xf32> -> vector<2x8x1xf32>
    %201 = vector.broadcast %200 : vector<2x8x1xf32> to vector<2x8x8xf32>
    %202 = arith.mulf %197, %201 : vector<2x8x8xf32>
    "tpu.trace_start"() <{level = 10 : i32, message = "bqk,bkd->bqd"}> : () -> ()
    %cst_75 = arith.constant dense<0.000000e+00> : vector<2x8x8xf32>
    %203 = tpu.matmul %202, %189, %cst_75 {dimension_numbers = #tpu.dot_dimension_numbers<[2], [1], [1], [2], [0, 0, 0, 1, 1, 2], [0], [0]>} : vector<2x8x8xf32>, vector<2x8x8xf32>, vector<2x8x8xf32> -> vector<2x8x8xf32>
    "tpu.trace_stop"() : () -> ()
    %204 = vector.extract_strided_slice %186 {offsets = [0, 0, 8], sizes = [2, 8, 8], strides = [1, 1, 1]} : vector<2x8x96xf32> to vector<2x8x8xf32>
    %205 = vector.extract_strided_slice %186 {offsets = [0, 0, 40], sizes = [2, 8, 8], strides = [1, 1, 1]} : vector<2x8x96xf32> to vector<2x8x8xf32>
    %206 = vector.extract_strided_slice %186 {offsets = [0, 0, 72], sizes = [2, 8, 8], strides = [1, 1, 1]} : vector<2x8x96xf32> to vector<2x8x8xf32>
    "tpu.trace_start"() <{level = 10 : i32, message = "bqd,bkd->bqk"}> : () -> ()
    %cst_76 = arith.constant dense<0.000000e+00> : vector<2x8x8xf32>
    %207 = tpu.matmul %204, %205, %cst_76 {dimension_numbers = #tpu.dot_dimension_numbers<[2], [2], [1], [1], [0, 0, 0, 1, 1, 1], [0], [0]>} : vector<2x8x8xf32>, vector<2x8x8xf32>, vector<2x8x8xf32> -> vector<2x8x8xf32>
    "tpu.trace_stop"() : () -> ()
    %cst_77 = arith.constant 0.353553385 : f32
    %208 = vector.broadcast %cst_77 : f32 to vector<2x8x8xf32>
    %209 = arith.mulf %207, %208 : vector<2x8x8xf32>
    %cst_78 = arith.constant dense<0xFF800000> : vector<2x8xf32>
    %210 = vector.multi_reduction <maximumf>, %209, %cst_78 [2] : vector<2x8x8xf32> to vector<2x8xf32>
    %211 = vector.shape_cast %210 : vector<2x8xf32> to vector<2x8x1xf32>
    %212 = vector.broadcast %211 : vector<2x8x1xf32> to vector<2x8x8xf32>
    %213 = arith.subf %209, %212 : vector<2x8x8xf32>
    %214 = math.exp %213 : vector<2x8x8xf32>
    %cst_79 = arith.constant dense<0.000000e+00> : vector<2x8xf32>
    %215 = vector.multi_reduction <add>, %214, %cst_79 [2] : vector<2x8x8xf32> to vector<2x8xf32>
    %216 = vector.shape_cast %215 : vector<2x8xf32> to vector<2x8x1xf32>
    %217 = tpu.reciprocal %216 {approx = true} : vector<2x8x1xf32> -> vector<2x8x1xf32>
    %218 = vector.broadcast %217 : vector<2x8x1xf32> to vector<2x8x8xf32>
    %219 = arith.mulf %214, %218 : vector<2x8x8xf32>
    "tpu.trace_start"() <{level = 10 : i32, message = "bqk,bkd->bqd"}> : () -> ()
    %cst_80 = arith.constant dense<0.000000e+00> : vector<2x8x8xf32>
    %220 = tpu.matmul %219, %206, %cst_80 {dimension_numbers = #tpu.dot_dimension_numbers<[2], [1], [1], [2], [0, 0, 0, 1, 1, 2], [0], [0]>} : vector<2x8x8xf32>, vector<2x8x8xf32>, vector<2x8x8xf32> -> vector<2x8x8xf32>
    "tpu.trace_stop"() : () -> ()
    %221 = vector.extract_strided_slice %186 {offsets = [0, 0, 16], sizes = [2, 8, 8], strides = [1, 1, 1]} : vector<2x8x96xf32> to vector<2x8x8xf32>
    %222 = vector.extract_strided_slice %186 {offsets = [0, 0, 48], sizes = [2, 8, 8], strides = [1, 1, 1]} : vector<2x8x96xf32> to vector<2x8x8xf32>
    %223 = vector.extract_strided_slice %186 {offsets = [0, 0, 80], sizes = [2, 8, 8], strides = [1, 1, 1]} : vector<2x8x96xf32> to vector<2x8x8xf32>
    "tpu.trace_start"() <{level = 10 : i32, message = "bqd,bkd->bqk"}> : () -> ()
    %cst_81 = arith.constant dense<0.000000e+00> : vector<2x8x8xf32>
    %224 = tpu.matmul %221, %222, %cst_81 {dimension_numbers = #tpu.dot_dimension_numbers<[2], [2], [1], [1], [0, 0, 0, 1, 1, 1], [0], [0]>} : vector<2x8x8xf32>, vector<2x8x8xf32>, vector<2x8x8xf32> -> vector<2x8x8xf32>
    "tpu.trace_stop"() : () -> ()
    %cst_82 = arith.constant 0.353553385 : f32
    %225 = vector.broadcast %cst_82 : f32 to vector<2x8x8xf32>
    %226 = arith.mulf %224, %225 : vector<2x8x8xf32>
    %cst_83 = arith.constant dense<0xFF800000> : vector<2x8xf32>
    %227 = vector.multi_reduction <maximumf>, %226, %cst_83 [2] : vector<2x8x8xf32> to vector<2x8xf32>
    %228 = vector.shape_cast %227 : vector<2x8xf32> to vector<2x8x1xf32>
    %229 = vector.broadcast %228 : vector<2x8x1xf32> to vector<2x8x8xf32>
    %230 = arith.subf %226, %229 : vector<2x8x8xf32>
    %231 = math.exp %230 : vector<2x8x8xf32>
    %cst_84 = arith.constant dense<0.000000e+00> : vector<2x8xf32>
    %232 = vector.multi_reduction <add>, %231, %cst_84 [2] : vector<2x8x8xf32> to vector<2x8xf32>
    %233 = vector.shape_cast %232 : vector<2x8xf32> to vector<2x8x1xf32>
    %234 = tpu.reciprocal %233 {approx = true} : vector<2x8x1xf32> -> vector<2x8x1xf32>
    %235 = vector.broadcast %234 : vector<2x8x1xf32> to vector<2x8x8xf32>
    %236 = arith.mulf %231, %235 : vector<2x8x8xf32>
    "tpu.trace_start"() <{level = 10 : i32, message = "bqk,bkd->bqd"}> : () -> ()
    %cst_85 = arith.constant dense<0.000000e+00> : vector<2x8x8xf32>
    %237 = tpu.matmul %236, %223, %cst_85 {dimension_numbers = #tpu.dot_dimension_numbers<[2], [1], [1], [2], [0, 0, 0, 1, 1, 2], [0], [0]>} : vector<2x8x8xf32>, vector<2x8x8xf32>, vector<2x8x8xf32> -> vector<2x8x8xf32>
    "tpu.trace_stop"() : () -> ()
    %238 = vector.extract_strided_slice %186 {offsets = [0, 0, 24], sizes = [2, 8, 8], strides = [1, 1, 1]} : vector<2x8x96xf32> to vector<2x8x8xf32>
    %239 = vector.extract_strided_slice %186 {offsets = [0, 0, 56], sizes = [2, 8, 8], strides = [1, 1, 1]} : vector<2x8x96xf32> to vector<2x8x8xf32>
    %240 = vector.extract_strided_slice %186 {offsets = [0, 0, 88], sizes = [2, 8, 8], strides = [1, 1, 1]} : vector<2x8x96xf32> to vector<2x8x8xf32>
    "tpu.trace_start"() <{level = 10 : i32, message = "bqd,bkd->bqk"}> : () -> ()
    %cst_86 = arith.constant dense<0.000000e+00> : vector<2x8x8xf32>
    %241 = tpu.matmul %238, %239, %cst_86 {dimension_numbers = #tpu.dot_dimension_numbers<[2], [2], [1], [1], [0, 0, 0, 1, 1, 1], [0], [0]>} : vector<2x8x8xf32>, vector<2x8x8xf32>, vector<2x8x8xf32> -> vector<2x8x8xf32>
    "tpu.trace_stop"() : () -> ()
    %cst_87 = arith.constant 0.353553385 : f32
    %242 = vector.broadcast %cst_87 : f32 to vector<2x8x8xf32>
    %243 = arith.mulf %241, %242 : vector<2x8x8xf32>
    %cst_88 = arith.constant dense<0xFF800000> : vector<2x8xf32>
    %244 = vector.multi_reduction <maximumf>, %243, %cst_88 [2] : vector<2x8x8xf32> to vector<2x8xf32>
    %245 = vector.shape_cast %244 : vector<2x8xf32> to vector<2x8x1xf32>
    %246 = vector.broadcast %245 : vector<2x8x1xf32> to vector<2x8x8xf32>
    %247 = arith.subf %243, %246 : vector<2x8x8xf32>
    %248 = math.exp %247 : vector<2x8x8xf32>
    %cst_89 = arith.constant dense<0.000000e+00> : vector<2x8xf32>
    %249 = vector.multi_reduction <add>, %248, %cst_89 [2] : vector<2x8x8xf32> to vector<2x8xf32>
    %250 = vector.shape_cast %249 : vector<2x8xf32> to vector<2x8x1xf32>
    %251 = tpu.reciprocal %250 {approx = true} : vector<2x8x1xf32> -> vector<2x8x1xf32>
    %252 = vector.broadcast %251 : vector<2x8x1xf32> to vector<2x8x8xf32>
    %253 = arith.mulf %248, %252 : vector<2x8x8xf32>
    "tpu.trace_start"() <{level = 10 : i32, message = "bqk,bkd->bqd"}> : () -> ()
    %cst_90 = arith.constant dense<0.000000e+00> : vector<2x8x8xf32>
    %254 = tpu.matmul %253, %240, %cst_90 {dimension_numbers = #tpu.dot_dimension_numbers<[2], [1], [1], [2], [0, 0, 0, 1, 1, 2], [0], [0]>} : vector<2x8x8xf32>, vector<2x8x8xf32>, vector<2x8x8xf32> -> vector<2x8x8xf32>
    "tpu.trace_stop"() : () -> ()
    %255 = tpu.concatenate %203, %220, %237, %254 in 2 : vector<2x8x8xf32>, vector<2x8x8xf32>, vector<2x8x8xf32>, vector<2x8x8xf32> -> vector<2x8x32xf32>
    %256 = vector.shape_cast %255 : vector<2x8x32xf32> to vector<16x32xf32>
    %cst_91 = arith.constant dense<0.000000e+00> : vector<16x32xf32>
    %257 = tpu.matmul %256, %168, %cst_91 {dimension_numbers = #tpu.dot_dimension_numbers<[1], [0], [0], [1], [0, 0, 1, 1], [], []>} : vector<16x32xf32>, vector<32x32xf32>, vector<16x32xf32> -> vector<16x32xf32>
    %258 = vector.broadcast %176 : vector<1x32xf32> to vector<16x32xf32>
    %259 = arith.addf %257, %258 : vector<16x32xf32>
    %260 = arith.addf %164, %259 : vector<16x32xf32>
    %cst_92 = arith.constant dense<0.000000e+00> : vector<16xf32>
    %261 = vector.multi_reduction <add>, %260, %cst_92 [1] : vector<16x32xf32> to vector<16xf32>
    %262 = vector.shape_cast %261 : vector<16xf32> to vector<16x1xf32>
    %cst_93 = arith.constant 3.200000e+01 : f32
    %263 = vector.broadcast %cst_93 : f32 to vector<16x1xf32>
    %264 = arith.divf %262, %263 : vector<16x1xf32>
    %265 = vector.broadcast %264 : vector<16x1xf32> to vector<16x32xf32>
    %266 = arith.subf %260, %265 : vector<16x32xf32>
    %267 = arith.mulf %266, %266 : vector<16x32xf32>
    %cst_94 = arith.constant dense<0.000000e+00> : vector<16xf32>
    %268 = vector.multi_reduction <add>, %267, %cst_94 [1] : vector<16x32xf32> to vector<16xf32>
    %269 = vector.shape_cast %268 : vector<16xf32> to vector<16x1xf32>
    %cst_95 = arith.constant 3.200000e+01 : f32
    %270 = vector.broadcast %cst_95 : f32 to vector<16x1xf32>
    %271 = arith.divf %269, %270 : vector<16x1xf32>
    %272 = vector.broadcast %264 : vector<16x1xf32> to vector<16x32xf32>
    %273 = arith.subf %260, %272 : vector<16x32xf32>
    %cst_96 = arith.constant 9.99999974E-6 : f32
    %274 = vector.broadcast %cst_96 : f32 to vector<16x1xf32>
    %275 = arith.addf %271, %274 : vector<16x1xf32>
    %276 = math.rsqrt %275 : vector<16x1xf32>
    %277 = vector.broadcast %276 : vector<16x1xf32> to vector<16x32xf32>
    %278 = arith.mulf %273, %277 : vector<16x32xf32>
    %279 = vector.broadcast %179 : vector<1x32xf32> to vector<16x32xf32>
    %280 = arith.mulf %278, %279 : vector<16x32xf32>
    %281 = vector.broadcast %180 : vector<1x32xf32> to vector<16x32xf32>
    %282 = arith.addf %280, %281 : vector<16x32xf32>
    %cst_97 = arith.constant dense<0.000000e+00> : vector<16x64xf32>
    %283 = tpu.matmul %282, %170, %cst_97 {dimension_numbers = #tpu.dot_dimension_numbers<[1], [0], [0], [1], [0, 0, 1, 1], [], []>} : vector<16x32xf32>, vector<32x64xf32>, vector<16x64xf32> -> vector<16x64xf32>
    %284 = vector.broadcast %177 : vector<1x64xf32> to vector<16x64xf32>
    %285 = arith.addf %283, %284 : vector<16x64xf32>
    %cst_98 = arith.constant 0.000000e+00 : f32
    %286 = vector.broadcast %cst_98 : f32 to vector<16x64xf32>
    %287 = arith.maximumf %285, %286 : vector<16x64xf32>
    %cst_99 = arith.constant dense<0.000000e+00> : vector<16x32xf32>
    %288 = tpu.matmul %287, %172, %cst_99 {dimension_numbers = #tpu.dot_dimension_numbers<[1], [0], [0], [1], [0, 0, 1, 1], [], []>} : vector<16x64xf32>, vector<64x32xf32>, vector<16x32xf32> -> vector<16x32xf32>
    %289 = vector.broadcast %178 : vector<1x32xf32> to vector<16x32xf32>
    %290 = arith.addf %288, %289 : vector<16x32xf32>
    %291 = arith.addf %282, %290 : vector<16x32xf32>
    %cst_100 = arith.constant dense<0.000000e+00> : vector<16xf32>
    %292 = vector.multi_reduction <add>, %291, %cst_100 [1] : vector<16x32xf32> to vector<16xf32>
    %293 = vector.shape_cast %292 : vector<16xf32> to vector<16x1xf32>
    %cst_101 = arith.constant 3.200000e+01 : f32
    %294 = vector.broadcast %cst_101 : f32 to vector<16x1xf32>
    %295 = arith.divf %293, %294 : vector<16x1xf32>
    %296 = vector.broadcast %295 : vector<16x1xf32> to vector<16x32xf32>
    %297 = arith.subf %291, %296 : vector<16x32xf32>
    %298 = arith.mulf %297, %297 : vector<16x32xf32>
    %cst_102 = arith.constant dense<0.000000e+00> : vector<16xf32>
    %299 = vector.multi_reduction <add>, %298, %cst_102 [1] : vector<16x32xf32> to vector<16xf32>
    %300 = vector.shape_cast %299 : vector<16xf32> to vector<16x1xf32>
    %cst_103 = arith.constant 3.200000e+01 : f32
    %301 = vector.broadcast %cst_103 : f32 to vector<16x1xf32>
    %302 = arith.divf %300, %301 : vector<16x1xf32>
    %303 = vector.broadcast %295 : vector<16x1xf32> to vector<16x32xf32>
    %304 = arith.subf %291, %303 : vector<16x32xf32>
    %cst_104 = arith.constant 9.99999974E-6 : f32
    %305 = vector.broadcast %cst_104 : f32 to vector<16x1xf32>
    %306 = arith.addf %302, %305 : vector<16x1xf32>
    %307 = math.rsqrt %306 : vector<16x1xf32>
    %308 = vector.broadcast %307 : vector<16x1xf32> to vector<16x32xf32>
    %309 = arith.mulf %304, %308 : vector<16x32xf32>
    %310 = vector.broadcast %181 : vector<1x32xf32> to vector<16x32xf32>
    %311 = arith.mulf %309, %310 : vector<16x32xf32>
    %312 = vector.broadcast %182 : vector<1x32xf32> to vector<16x32xf32>
    %313 = arith.addf %311, %312 : vector<16x32xf32>
    %c0_105 = arith.constant 0 : index
    %c0_106 = arith.constant 0 : index
    %314 = vector.load %arg9[%c0_105, %c0_106] : memref<32x5xf32, #tpu.memory_space<vmem>>, vector<32x5xf32>
    %c0_107 = arith.constant 0 : index
    %c0_108 = arith.constant 0 : index
    %315 = vector.load %arg10[%c0_107, %c0_108] : memref<1x5xf32, #tpu.memory_space<vmem>>, vector<1x5xf32>
    %316 = vector.shape_cast %313 : vector<16x32xf32> to vector<2x8x32xf32>
    %cst_109 = arith.constant dense<0.000000e+00> : vector<2x32xf32>
    %317 = vector.multi_reduction <add>, %316, %cst_109 [1] : vector<2x8x32xf32> to vector<2x32xf32>
    %cst_110 = arith.constant 1.250000e-01 : f32
    %318 = vector.broadcast %cst_110 : f32 to vector<2x32xf32>
    %319 = arith.mulf %317, %318 : vector<2x32xf32>
    %cst_111 = arith.constant dense<0.000000e+00> : vector<2x5xf32>
    %320 = tpu.matmul %319, %314, %cst_111 {dimension_numbers = #tpu.dot_dimension_numbers<[1], [0], [0], [1], [0, 0, 1, 1], [], []>} : vector<2x32xf32>, vector<32x5xf32>, vector<2x5xf32> -> vector<2x5xf32>
    %321 = vector.broadcast %315 : vector<1x5xf32> to vector<2x5xf32>
    %322 = arith.addf %320, %321 : vector<2x5xf32>
    %cst_112 = arith.constant dense<0xFF800000> : vector<2xf32>
    %323 = vector.multi_reduction <maximumf>, %322, %cst_112 [1] : vector<2x5xf32> to vector<2xf32>
    %324 = vector.shape_cast %323 : vector<2xf32> to vector<2x1xf32>
    %325 = vector.broadcast %324 : vector<2x1xf32> to vector<2x5xf32>
    %326 = arith.subf %322, %325 : vector<2x5xf32>
    %327 = math.exp %326 : vector<2x5xf32>
    %cst_113 = arith.constant dense<0.000000e+00> : vector<2xf32>
    %328 = vector.multi_reduction <add>, %327, %cst_113 [1] : vector<2x5xf32> to vector<2xf32>
    %329 = vector.shape_cast %328 : vector<2xf32> to vector<2x1xf32>
    %330 = vector.broadcast %329 : vector<2x1xf32> to vector<2x5xf32>
    %331 = arith.divf %327, %330 : vector<2x5xf32>
    %c0_114 = arith.constant 0 : index
    %c0_115 = arith.constant 0 : index
    %332 = vector.load %arg11[%c0_114, %c0_115] : memref<2x5xf32, #tpu.memory_space<vmem>>, vector<2x5xf32>
    tpu.vector_store %arg11[%c0_114, %c0_115], %331 {strides = array<i32>} : memref<2x5xf32, #tpu.memory_space<vmem>>, vector<2x5xf32>,
    return
  }
  func.func @transform_0(%arg0: i32) -> (i32, i32) {
    %c0_i32 = arith.constant 0 : i32
    %c0_i32_0 = arith.constant 0 : i32
    %c0_i32_1 = arith.constant 0 : i32
    return %c0_i32, %c0_i32_0 : i32, i32
  }
  func.func @transform_1(%arg0: i32) -> (i32, i32) {
    %c0_i32 = arith.constant 0 : i32
    %c0_i32_0 = arith.constant 0 : i32
    %c0_i32_1 = arith.constant 0 : i32
    return %c0_i32, %c0_i32_0 : i32, i32
  }
  func.func @transform_2(%arg0: i32) -> (i32, i32) {
    %c0_i32 = arith.constant 0 : i32
    %c0_i32_0 = arith.constant 0 : i32
    %c0_i32_1 = arith.constant 0 : i32
    return %c0_i32, %c0_i32_0 : i32, i32
  }
  func.func @transform_3(%arg0: i32) -> (i32, i32, i32) {
    %c0_i32 = arith.constant 0 : i32
    %c0_i32_0 = arith.constant 0 : i32
    %c0_i32_1 = arith.constant 0 : i32
    %c0_i32_2 = arith.constant 0 : i32
    return %c0_i32, %c0_i32_0, %c0_i32_1 : i32, i32, i32
  }
  func.func @transform_4(%arg0: i32) -> (i32, i32, i32) {
    %c0_i32 = arith.constant 0 : i32
    %c0_i32_0 = arith.constant 0 : i32
    %c0_i32_1 = arith.constant 0 : i32
    %c0_i32_2 = arith.constant 0 : i32
    return %c0_i32, %c0_i32_0, %c0_i32_1 : i32, i32, i32
  }
  func.func @transform_5(%arg0: i32) -> (i32, i32, i32) {
    %c0_i32 = arith.constant 0 : i32
    %c0_i32_0 = arith.constant 0 : i32
    %c0_i32_1 = arith.constant 0 : i32
    %c0_i32_2 = arith.constant 0 : i32
    return %c0_i32, %c0_i32_0, %c0_i32_1 : i32, i32, i32
  }
  func.func @transform_6(%arg0: i32) -> (i32, i32, i32) {
    %c0_i32 = arith.constant 0 : i32
    %c0_i32_0 = arith.constant 0 : i32
    %c0_i32_1 = arith.constant 0 : i32
    %c0_i32_2 = arith.constant 0 : i32
    return %c0_i32, %c0_i32_0, %c0_i32_1 : i32, i32, i32
  }
  func.func @transform_7(%arg0: i32) -> (i32, i32, i32) {
    %c0_i32 = arith.constant 0 : i32
    %c0_i32_0 = arith.constant 0 : i32
    %c0_i32_1 = arith.constant 0 : i32
    %c0_i32_2 = arith.constant 0 : i32
    return %c0_i32, %c0_i32_0, %c0_i32_1 : i32, i32, i32
  }
  func.func @transform_8(%arg0: i32) -> (i32, i32) {
    %c0_i32 = arith.constant 0 : i32
    %c0_i32_0 = arith.constant 0 : i32
    %c0_i32_1 = arith.constant 0 : i32
    return %c0_i32, %c0_i32_0 : i32, i32
  }
  func.func @transform_9(%arg0: i32) -> (i32, i32) {
    %c0_i32 = arith.constant 0 : i32
    %c0_i32_0 = arith.constant 0 : i32
    %c0_i32_1 = arith.constant 0 : i32
    return %c0_i32, %c0_i32_0 : i32, i32
  }
  func.func @transform_10(%arg0: i32) -> (i32, i32) {
    %c0_i32 = arith.constant 0 : i32
    %c0_i32_0 = arith.constant 0 : i32
    %c0_i32_1 = arith.constant 0 : i32
    return %c0_i32, %c0_i32_0 : i32, i32
  }
}

</mosaic_0001>

<bundles_post_ra>
// kernel: classifier_forward.1
= control target key start
LH: loop header
LB: loop body
LE: loop exit
PB: predicated region body
PF: predicated region fallthrough
CT: control target
= control target key end

     0   :  { %v5322_v2 = vmov 0   ;;  %s6446_s0 = inlined_call_operand.vmem [shape: s32[16,1], index: 0, kind: input, shape index: {}]   ;;  %s6447_s1 = inlined_call_operand.vmem [shape: f32[1024,32], index: 1, kind: input, shape index: {}]   ;;  %s6448_s2 = inlined_call_operand.vmem [shape: f32[16,32], index: 2, kind: input, shape index: {}]   ;;  %s6449_s3 = inlined_call_operand.vmem [shape: f32[2,32,96], index: 3, kind: input, shape index: {}]   ;;  %s6450_s4 = inlined_call_operand.vmem [shape: f32[2,32,32], index: 4, kind: input, shape index: {}]   ;;  %s6451_s5 = inlined_call_operand.vmem [shape: f32[2,32,64], index: 5, kind: input, shape index: {}]   ;;  %s6452_s6 = inlined_call_operand.vmem [shape: f32[2,64,32], index: 6, kind: input, shape index: {}]   ;;  %s6453_s7 = inlined_call_operand.vmem [shape: f32[2,8,96], index: 7, kind: input, shape index: {}]   ;;  %s6454_s8 = inlined_call_operand.vmem [shape: f32[32,5], index: 8, kind: input, shape index: {}]   ;;  %s6455_s9 = inlined_call_operand.vmem [shape: f32[1,5], index: 9, kind: input, shape index: {}]   ;;  %s6456_s10 = inlined_call_operand.hbm [shape: f32[2,5], index: 10, kind: output, shape index: {}]  }
   0x1   :  { %v36_v0 = vld [vmem:[%s6446_s0] sm:$0xff]  ;;  %5213 = vset.pattern.permute.xlu0 %v5322_v2  ;;  %v37_v3 = vld [vmem:[%s6446_s0 + $0x8] sm:$0xff]  ;;  %v119_v14 = vld [vmem:[%s6447_s1 + $0x90] sm:$0xff] }
   0x2   :  { %v117_v1 = vld [vmem:[%s6447_s1 + $0x80] sm:$0xff]  ;;  %v118_v4 = vld [vmem:[%s6447_s1 + $0x88] sm:$0xff]  ;;  %48 = vperm.xlu0 %5213, %v36_v0   ;;  %v120_v15 = vld [vmem:[%s6447_s1 + $0x98] sm:$0xff] }
   0x3   :  { %v149_v5 = vld [vmem:[%s6447_s1 + $0x180] sm:$0xff]  ;;  %v150_v6 = vld [vmem:[%s6447_s1 + $0x188] sm:$0xff]  ;;  %v4978_v7 = vpack.c.bf16 %v118_v4, %v117_v1  ;;  %v4982_v17 = vpack.c.bf16 %v120_v15, %v119_v14  ;;  %v151_v18 = vld [vmem:[%s6447_s1 + $0x190] sm:$0xff] }
   0x4   :  { %v5010_v8 = vpack.c.bf16 %v150_v6, %v149_v5  ;;  %v101_v9 = vld [vmem:[%s6447_s1] sm:$0xff]  ;;  %v102_v10 = vld [vmem:[%s6447_s1 + $0x8] sm:$0xff]  ;;  %v152_v19 = vld [vmem:[%s6447_s1 + $0x198] sm:$0xff] }
   0x5   :  { %v133_v11 = vld [vmem:[%s6447_s1 + $0x100] sm:$0xff]  ;;  %v4980_v12 = vpack.c.bf16 %v102_v10, %v101_v9  ;;  %v134_v13 = vld [vmem:[%s6447_s1 + $0x108] sm:$0xff]  ;;  %4979 = vmatprep.subr.bf16.mxu0 %v4978_v7  ;;  %v103_v20 = vld [vmem:[%s6447_s1 + $0x10] sm:$0xff]  ;;  %v5014_v21 = vpack.c.bf16 %v152_v19, %v151_v18 }
   0x6   :  { %5011 = vmatprep.subr.bf16.mxu1 %v5010_v8  ;;  %v5012_v16 = vpack.c.bf16 %v134_v13, %v133_v11  ;;  %v104_v22 = vld [vmem:[%s6447_s1 + $0x18] sm:$0xff]  ;;  %v135_v23 = vld [vmem:[%s6447_s1 + $0x110] sm:$0xff]  ;;  %51 = vperm.xlu0 %5213, %v37_v3   ;;  %v121_v27 = vld [vmem:[%s6447_s1 + $0xa0] sm:$0xff] }
   0x7   :  { %4981 = vmatpush3.bf16.msra.mxu0 %v4980_v12  ;;  %v136_v24 = vld [vmem:[%s6447_s1 + $0x118] sm:$0xff]  ;;  %v4984_v25 = vpack.c.bf16 %v104_v22, %v103_v20  ;;  %v122_v28 = vld [vmem:[%s6447_s1 + $0xa8] sm:$0xff]  ;;  %v153_v29 = vld [vmem:[%s6447_s1 + $0x1a0] sm:$0xff] }
   0x8   :  { %5013 = vmatpush3.bf16.msra.mxu1 %v5012_v16  ;;  %v5016_v26 = vpack.c.bf16 %v136_v24, %v135_v23  ;;  %4983 = vmatprep.subr.bf16.mxu0 %v4982_v17  ;;  %v4986_v30 = vpack.c.bf16 %v122_v28, %v121_v27  ;;  %v154_v31 = vld [vmem:[%s6447_s1 + $0x1a8] sm:$0xff]  ;;  %v105_v32 = vld [vmem:[%s6447_s1 + $0x20] sm:$0xff]  ;;  %v123_v37 = vld [vmem:[%s6447_s1 + $0xb0] sm:$0xff] }
   0x9   :  { %5015 = vmatprep.subr.bf16.mxu1 %v5014_v21  ;;  %v106_v33 = vld [vmem:[%s6447_s1 + $0x28] sm:$0xff]  ;;  %v5018_v34 = vpack.c.bf16 %v154_v31, %v153_v29  ;;  %v137_v35 = vld [vmem:[%s6447_s1 + $0x120] sm:$0xff]  ;;  %v124_v39 = vld [vmem:[%s6447_s1 + $0xb8] sm:$0xff] }
   0xa   :  { %v138_v36 = vld [vmem:[%s6447_s1 + $0x128] sm:$0xff]  ;;  %v4988_v38 = vpack.c.bf16 %v106_v33, %v105_v32  ;;  %v155_v40 = vld [vmem:[%s6447_s1 + $0x1b0] sm:$0xff]  ;;  %v156_v41 = vld [vmem:[%s6447_s1 + $0x1b8] sm:$0xff]  ;;  %v4990_v43 = vpack.c.bf16 %v124_v39, %v123_v37 }
   0xb   :  { %4985 = vmatpush3.bf16.msra.mxu0 %v4984_v25  ;;  %v5020_v42 = vpack.c.bf16 %v138_v36, %v137_v35  ;;  %v107_v44 = vld [vmem:[%s6447_s1 + $0x30] sm:$0xff]  ;;  %v108_v45 = vld [vmem:[%s6447_s1 + $0x38] sm:$0xff]  ;;  %v5022_v47 = vpack.c.bf16 %v156_v41, %v155_v40  ;;  %v125_v49 = vld [vmem:[%s6447_s1 + $0xc0] sm:$0xff] }
   0xc   :  { %5017 = vmatpush3.bf16.msra.mxu1 %v5016_v26  ;;  %4987 = vmatprep.subr.bf16.mxu0 %v4986_v30  ;;  %v139_v46 = vld [vmem:[%s6447_s1 + $0x130] sm:$0xff]  ;;  %v140_v48 = vld [vmem:[%s6447_s1 + $0x138] sm:$0xff]  ;;  %v126_v50 = vld [vmem:[%s6447_s1 + $0xc8] sm:$0xff]  ;;  %v4992_v53 = vpack.c.bf16 %v108_v45, %v107_v44 }
   0xd   :  { %5019 = vmatprep.subr.bf16.mxu1 %v5018_v34  ;;  %v157_v51 = vld [vmem:[%s6447_s1 + $0x1c0] sm:$0xff]  ;;  %v158_v52 = vld [vmem:[%s6447_s1 + $0x1c8] sm:$0xff]  ;;  %v5024_v54 = vpack.c.bf16 %v140_v48, %v139_v46  ;;  %v4994_v55 = vpack.c.bf16 %v126_v50, %v125_v49  ;;  %v127_v61 = vld [vmem:[%s6447_s1 + $0xd0] sm:$0xff] }
   0xe   :  { %v109_v56 = vld [vmem:[%s6447_s1 + $0x40] sm:$0xff]  ;;  %v110_v57 = vld [vmem:[%s6447_s1 + $0x48] sm:$0xff]  ;;  %v5026_v59 = vpack.c.bf16 %v158_v52, %v157_v51  ;;  %v128_v62 = vld [vmem:[%s6447_s1 + $0xd8] sm:$0xff] }
   0xf   :  { %4989 = vmatpush3.bf16.msra.mxu0 %v4988_v38  ;;  %v141_v58 = vld [vmem:[%s6447_s1 + $0x140] sm:$0xff]  ;;  %v142_v60 = vld [vmem:[%s6447_s1 + $0x148] sm:$0xff]  ;;  %v159_v63 = vld [vmem:[%s6447_s1 + $0x1d0] sm:$0xff]  ;;  %v4996_v1 = vpack.c.bf16 %v110_v57, %v109_v56  ;;  %v4998_v3 = vpack.c.bf16 %v128_v62, %v127_v61 }
  0x10   :  { %5021 = vmatpush3.bf16.msra.mxu1 %v5020_v42  ;;  %4991 = vmatprep.subr.bf16.mxu0 %v4990_v43  ;;  %v160_v0 = vld [vmem:[%s6447_s1 + $0x1d8] sm:$0xff]  ;;  %v5028_v2 = vpack.c.bf16 %v142_v60, %v141_v58  ;;  %v111_v4 = vld [vmem:[%s6447_s1 + $0x50] sm:$0xff]  ;;  %v129_v9 = vld [vmem:[%s6447_s1 + $0xe0] sm:$0xff] }
  0x11   :  { %5023 = vmatprep.subr.bf16.mxu1 %v5022_v47  ;;  %v112_v5 = vld [vmem:[%s6447_s1 + $0x58] sm:$0xff]  ;;  %v143_v6 = vld [vmem:[%s6447_s1 + $0x150] sm:$0xff]  ;;  %v5030_v7 = vpack.c.bf16 %v160_v0, %v159_v63  ;;  %v130_v10 = vld [vmem:[%s6447_s1 + $0xe8] sm:$0xff] }
  0x12   :  { %v144_v8 = vld [vmem:[%s6447_s1 + $0x158] sm:$0xff]  ;;  %v161_v11 = vld [vmem:[%s6447_s1 + $0x1e0] sm:$0xff]  ;;  %v162_v12 = vld [vmem:[%s6447_s1 + $0x1e8] sm:$0xff]  ;;  %v5000_v13 = vpack.c.bf16 %v112_v5, %v111_v4  ;;  %v5002_v15 = vpack.c.bf16 %v130_v10, %v129_v9 }
  0x13   :  { %4993 = vmatpush3.bf16.msra.mxu0 %v4992_v53  ;;  %v5032_v14 = vpack.c.bf16 %v144_v8, %v143_v6  ;;  %v113_v16 = vld [vmem:[%s6447_s1 + $0x60] sm:$0xff]  ;;  %v114_v17 = vld [vmem:[%s6447_s1 + $0x68] sm:$0xff]  ;;  %v5034_v19 = vpack.c.bf16 %v162_v12, %v161_v11  ;;  %v131_v21 = vld [vmem:[%s6447_s1 + $0xf0] sm:$0xff] }
  0x14   :  { %5025 = vmatpush3.bf16.msra.mxu1 %v5024_v54  ;;  %4995 = vmatprep.subr.bf16.mxu0 %v4994_v55  ;;  %v145_v18 = vld [vmem:[%s6447_s1 + $0x160] sm:$0xff]  ;;  %v146_v20 = vld [vmem:[%s6447_s1 + $0x168] sm:$0xff]  ;;  %v132_v22 = vld [vmem:[%s6447_s1 + $0xf8] sm:$0xff]  ;;  %v5004_v25 = vpack.c.bf16 %v114_v17, %v113_v16 }
  0x15   :  { %5027 = vmatprep.subr.bf16.mxu1 %v5026_v59  ;;  %v163_v23 = vld [vmem:[%s6447_s1 + $0x1f0] sm:$0xff]  ;;  %v164_v24 = vld [vmem:[%s6447_s1 + $0x1f8] sm:$0xff]  ;;  %v5036_v26 = vpack.c.bf16 %v146_v20, %v145_v18  ;;  %v5006_v27 = vpack.c.bf16 %v132_v22, %v131_v21  ;;  %v181_v33 = vld [vmem:[%s6447_s1 + $0x280] sm:$0xff] }
  0x16   :  { %v115_v28 = vld [vmem:[%s6447_s1 + $0x70] sm:$0xff]  ;;  %v116_v29 = vld [vmem:[%s6447_s1 + $0x78] sm:$0xff]  ;;  %v5038_v31 = vpack.c.bf16 %v164_v24, %v163_v23  ;;  %v182_v34 = vld [vmem:[%s6447_s1 + $0x288] sm:$0xff] }
  0x17   :  { %4997 = vmatpush3.bf16.msra.mxu0 %v4996_v1  ;;  %v147_v30 = vld [vmem:[%s6447_s1 + $0x170] sm:$0xff]  ;;  %v148_v32 = vld [vmem:[%s6447_s1 + $0x178] sm:$0xff]  ;;  %v213_v35 = vld [vmem:[%s6447_s1 + $0x380] sm:$0xff]  ;;  %v5008_v37 = vpack.c.bf16 %v116_v29, %v115_v28  ;;  %v5042_v39 = vpack.c.bf16 %v182_v34, %v181_v33 }
  0x18   :  { %5029 = vmatpush3.bf16.msra.mxu1 %v5028_v2  ;;  %4999 = vmatprep.subr.bf16.mxu0 %v4998_v3  ;;  %v214_v36 = vld [vmem:[%s6447_s1 + $0x388] sm:$0xff]  ;;  %v5040_v38 = vpack.c.bf16 %v148_v32, %v147_v30 }
  0x19   :  { %5031 = vmatprep.subr.bf16.mxu1 %v5030_v7  ;;  %v5074_v40 = vpack.c.bf16 %v214_v36, %v213_v35 }
  0x1b   :  { %5001 = vmatpush3.bf16.msra.mxu0 %v5000_v13 }
  0x1c   :  { %5033 = vmatpush3.bf16.msra.mxu1 %v5032_v14  ;;  %5003 = vmatprep.subr.bf16.mxu0 %v5002_v15 }
  0x1d   :  { %5035 = vmatprep.subr.bf16.mxu1 %v5034_v19 }
  0x1f   :  { %5005 = vmatpush3.bf16.msra.mxu0 %v5004_v25 }
  0x20   :  { %5037 = vmatpush3.bf16.msra.mxu1 %v5036_v26  ;;  %5007 = vmatprep.subr.bf16.mxu0 %v5006_v27 }
  0x21   :  { %5039 = vmatprep.subr.bf16.mxu1 %v5038_v31 }
  0x23   :  { %5009 = vmatpush3.bf16.msra.mxu0 %v5008_v37 }
  0x24   :  { %5041 = vmatpush3.bf16.msra.mxu1 %v5040_v38  ;;  %5043 = vmatprep.subr.bf16.mxu0 %v5042_v39 }
  0x25   :  { %5075 = vmatprep.subr.bf16.mxu1 %v5074_v40 }
  0x26   :  { %15 = vsyncpa [#allocation3], 0  ;;  %v38_v41 = vlaneseq  ;;  %v165_v43 = vld [vmem:[%s6447_s1 + $0x200] sm:$0xff]  ;;  %v166_v44 = vld [vmem:[%s6447_s1 + $0x208] sm:$0xff]  ;;  %v5323_v63 = vmov 1.0   ;;  %s5327_s30 = smov 96  }
  0x27   :  { %v197_v45 = vld [vmem:[%s6447_s1 + $0x300] sm:$0xff]  ;;  %v198_v46 = vld [vmem:[%s6447_s1 + $0x308] sm:$0xff]  ;;  %v183_v47 = vld [vmem:[%s6447_s1 + $0x290] sm:$0xff]  ;;  %v5044_v55 = vpack.c.bf16 %v166_v44, %v165_v43  ;;  %s5328_s11 = smov 64   ;;  %s5329_s12 = smov 88  }
  0x28   :  { %v5609_v42 = vand.u32 127, %v38_v41  ;;  %v184_v51 = vld [vmem:[%s6447_s1 + $0x298] sm:$0xff]  ;;  %v215_v52 = vld [vmem:[%s6447_s1 + $0x390] sm:$0xff]  ;;  %v5076_v56 = vpack.c.bf16 %v198_v46, %v197_v45  ;;  %v185_v0 = vld [vmem:[%s6447_s1 + $0x2a0] sm:$0xff]  ;;  %s5330_s13 = smov 120   ;;  %s5331_s14 = smov 56  }
  0x29   :  { %v216_v53 = vld [vmem:[%s6447_s1 + $0x398] sm:$0xff]  ;;  %v5046_v57 = vpack.c.bf16 %v184_v51, %v183_v47  ;;  %v167_v59 = vld [vmem:[%s6447_s1 + $0x210] sm:$0xff]  ;;  %v186_v1 = vld [vmem:[%s6447_s1 + $0x2a8] sm:$0xff]  ;;  %s5332_s15 = smov 80   ;;  %s5333_s16 = smov 112  }
  0x2a   :  { %v40_v48 = vadd.s32 128, %v5609_v42  ;;  %v42_v49 = vadd.s32 384, %v5609_v42  ;;  %v41_v50 = vadd.s32 256, %v5609_v42  ;;  %v5078_v58 = vpack.c.bf16 %v216_v53, %v215_v52  ;;  %v168_v60 = vld [vmem:[%s6447_s1 + $0x218] sm:$0xff]  ;;  %v199_v61 = vld [vmem:[%s6447_s1 + $0x310] sm:$0xff]  ;;  %v217_v2 = vld [vmem:[%s6447_s1 + $0x3a0] sm:$0xff] }
  0x2b   :  { %v200_v62 = vld [vmem:[%s6447_s1 + $0x318] sm:$0xff]  ;;  %v218_v3 = vld [vmem:[%s6447_s1 + $0x3a8] sm:$0xff]  ;;  %v5048_v5 = vpack.c.bf16 %v168_v60, %v167_v59  ;;  %v5676_v7 = vadd.s32 640, %v5609_v42  ;;  %v5679_v8 = vadd.s32 896, %v5609_v42  ;;  %v169_v9 = vld [vmem:[%s6447_s1 + $0x220] sm:$0xff]  ;;  %v5050_v14 = vpack.c.bf16 %v186_v1, %v185_v0  ;;  %s5334_s17 = smov 48  }
  0x2c   :  { %v5080_v6 = vpack.c.bf16 %v200_v62, %v199_v61  ;;  %v170_v10 = vld [vmem:[%s6447_s1 + $0x228] sm:$0xff]  ;;  %v201_v11 = vld [vmem:[%s6447_s1 + $0x320] sm:$0xff]  ;;  %v187_v13 = vld [vmem:[%s6447_s1 + $0x2b0] sm:$0xff]  ;;  %v5082_v15 = vpack.c.bf16 %v218_v3, %v217_v2  ;;  %s5335_s18 = smov 72   ;;  %s5336_s19 = smov 104  }
  0x2d   :  { %v202_v12 = vld [vmem:[%s6447_s1 + $0x328] sm:$0xff]  ;;  %v188_v16 = vld [vmem:[%s6447_s1 + $0x2b8] sm:$0xff]  ;;  %v219_v17 = vld [vmem:[%s6447_s1 + $0x3b0] sm:$0xff]  ;;  %v5052_v19 = vpack.c.bf16 %v170_v10, %v169_v9  ;;  %s5337_s20 = smov 40   ;;  %s5339_s21 = smov 16  }
  0x2e   :  { %v220_v18 = vld [vmem:[%s6447_s1 + $0x3b8] sm:$0xff]  ;;  %v5084_v20 = vpack.c.bf16 %v202_v12, %v201_v11  ;;  %v171_v21 = vld [vmem:[%s6447_s1 + $0x230] sm:$0xff]  ;;  %v5054_v23 = vpack.c.bf16 %v188_v16, %v187_v13  ;;  %v189_v27 = vld [vmem:[%s6447_s1 + $0x2c0] sm:$0xff] }
  0x2f   :  { %v172_v22 = vld [vmem:[%s6447_s1 + $0x238] sm:$0xff]  ;;  %v5086_v24 = vpack.c.bf16 %v220_v18, %v219_v17  ;;  %v203_v25 = vld [vmem:[%s6447_s1 + $0x330] sm:$0xff]  ;;  %v190_v28 = vld [vmem:[%s6447_s1 + $0x2c8] sm:$0xff] }
  0x30   :  { %v204_v26 = vld [vmem:[%s6447_s1 + $0x338] sm:$0xff]  ;;  %v221_v29 = vld [vmem:[%s6447_s1 + $0x3c0] sm:$0xff]  ;;  %v222_v30 = vld [vmem:[%s6447_s1 + $0x3c8] sm:$0xff]  ;;  %v5056_v31 = vpack.c.bf16 %v172_v22, %v171_v21  ;;  %v5058_v35 = vpack.c.bf16 %v190_v28, %v189_v27  ;;  %v45_v21 = vadd.s32 768, %v5609_v42 }
  0x31   :  { %v5088_v32 = vpack.c.bf16 %v204_v26, %v203_v25  ;;  %v173_v33 = vld [vmem:[%s6447_s1 + $0x240] sm:$0xff]  ;;  %v174_v34 = vld [vmem:[%s6447_s1 + $0x248] sm:$0xff]  ;;  %v5090_v36 = vpack.c.bf16 %v222_v30, %v221_v29  ;;  %v191_v39 = vld [vmem:[%s6447_s1 + $0x2d0] sm:$0xff] }
  0x32   :  { %v205_v37 = vld [vmem:[%s6447_s1 + $0x340] sm:$0xff]  ;;  %v206_v38 = vld [vmem:[%s6447_s1 + $0x348] sm:$0xff]  ;;  %v192_v40 = vld [vmem:[%s6447_s1 + $0x2d8] sm:$0xff]  ;;  %v5060_v45 = vpack.c.bf16 %v174_v34, %v173_v33 }
  0x33   :  { %v223_v43 = vld [vmem:[%s6447_s1 + $0x3d0] sm:$0xff]  ;;  %v224_v44 = vld [vmem:[%s6447_s1 + $0x3d8] sm:$0xff]  ;;  %v5092_v46 = vpack.c.bf16 %v206_v38, %v205_v37  ;;  %v193_v53 = vld [vmem:[%s6447_s1 + $0x2e0] sm:$0xff]  ;;  %v5857_v38 = vshrl.u32 %v38_v41, 7 }
  0x34   :  { %v175_v47 = vld [vmem:[%s6447_s1 + $0x250] sm:$0xff]  ;;  %v208_v52 = vld [vmem:[%s6447_s1 + $0x358] sm:$0xff]  ;;  %v177_v60 = vld [vmem:[%s6447_s1 + $0x260] sm:$0xff] }
  0x35   :  { %v207_v51 = vld [vmem:[%s6447_s1 + $0x350] sm:$0xff]  ;;  %v178_v61 = vld [vmem:[%s6447_s1 + $0x268] sm:$0xff]  ;;  %v209_v1 = vld [vmem:[%s6447_s1 + $0x360] sm:$0xff] }
  0x36   :  { %v5096_v59 = vpack.c.bf16 %v208_v52, %v207_v51  ;;  %v210_v2 = vld [vmem:[%s6447_s1 + $0x368] sm:$0xff]  ;;  %v195_v3 = vld [vmem:[%s6447_s1 + $0x2f0] sm:$0xff]  ;;  %v228_v9 = vld [vmem:[%s6447_s1 + $0x3f8] sm:$0xff]  ;;  %v5068_v10 = vpack.c.bf16 %v178_v61, %v177_v60 }
  0x37   :  { %v5100_v11 = vpack.c.bf16 %v210_v2, %v209_v1  ;;  %v179_v12 = vld [vmem:[%s6447_s1 + $0x270] sm:$0xff]  ;;  %v212_v17 = vld [vmem:[%s6447_s1 + $0x378] sm:$0xff] }
  0x38   :  { %v211_v16 = vld [vmem:[%s6447_s1 + $0x370] sm:$0xff] }
  0x81   :  { %v5638_v54 = vpop.permute.xlu0 %48 }
  0x82   :  { %vm54_vm0 = vcmp.eq.s32.totalorder %v40_v48, %v5638_v54  ;;  %vm56_vm1 = vcmp.eq.s32.totalorder %v42_v49, %v5638_v54  ;;  %vm53_vm2 = vcmp.eq.s32.totalorder %v5609_v42, %v5638_v54  ;;  %vm55_vm3 = vcmp.eq.s32.totalorder %v41_v50, %v5638_v54 }
  0x83   :  { %4322 = vmatprep.mubr.msk.f32.mxu0 %vm54_vm0, %v5323_v63  ;;  %4326 = vmatprep.mubr.msk.f32.mxu1 %vm56_vm1, %v5323_v63  ;;  %vm58_vm8 = vcmp.eq.s32.totalorder %v5676_v7, %v5638_v54  ;;  %vm60_vm9 = vcmp.eq.s32.totalorder %v5679_v8, %v5638_v54  ;;  %vm59_vm11 = vcmp.eq.s32.totalorder %v45_v21, %v5638_v54  ;;  %vm592_vm0 = vcmask 261120  }
  0x84   :  { %4323 = vmatmul.mubr.msk.f32.vlgmr.msra.gmra.mrb[0].mxu0 %vm53_vm2, %v5323_v63  ;;  %4327 = vmatmul.mubr.msk.f32.vlgmr.msra.gmra.mrb[0].mxu1 %vm55_vm3, %v5323_v63  ;;  %vm5326_vm1 = vmmov 0   ;;  %vm677_vm2 = vcmask 64512   ;;  %vm2027_vm3 = vcmask 130048  }
  0x85   :  { %5045 = vmatpush3.bf16.msra.mxu0 %v5044_v55  ;;  %5077 = vmatpush3.bf16.msra.mxu1 %v5076_v56  ;;  %v5673_v4 = vpop.permute.xlu0 %51  ;;  %v194_v55 = vld [vmem:[%s6447_s1 + $0x2e8] sm:$0xff]  ;;  %v225_v56 = vld [vmem:[%s6447_s1 + $0x3e0] sm:$0xff] }
  0x86   :  { %vm62_vm4 = vcmp.eq.s32.totalorder %v40_v48, %v5673_v4  ;;  %vm64_vm5 = vcmp.eq.s32.totalorder %v42_v49, %v5673_v4  ;;  %5047 = vmatprep.subr.bf16.mxu0 %v5046_v57  ;;  %5079 = vmatprep.subr.bf16.mxu1 %v5078_v58  ;;  %vm61_vm6 = vcmp.eq.s32.totalorder %v5609_v42, %v5673_v4  ;;  %v176_v48 = vld [vmem:[%s6447_s1 + $0x258] sm:$0xff]  ;;  %v226_v57 = vld [vmem:[%s6447_s1 + $0x3e8] sm:$0xff] }
  0x87   :  { %4324 = vmatprep.mubr.msk.f32.mxu0 %vm62_vm4, %v5323_v63  ;;  %4328 = vmatprep.mubr.msk.f32.mxu1 %vm64_vm5, %v5323_v63  ;;  %vm63_vm7 = vcmp.eq.s32.totalorder %v41_v50, %v5673_v4  ;;  %v5062_v49 = vpack.c.bf16 %v192_v40, %v191_v39  ;;  %v5094_v50 = vpack.c.bf16 %v224_v44, %v223_v43  ;;  %v4338_v43 = vld.sshfl [vmem:[%s6448_s2] sm:$0x11 pattern:$0x75316420]  ;;  %s6457_s2 = smov 24   ;;  %vm2030_vm4 = vcmask 195584  }
  0x88   :  { %4325 = vmatmul.mubr.msk.f32.gmra.mrb[2].mxu0 %vm61_vm6, %v5323_v63  ;;  %4329 = vmatmul.mubr.msk.f32.gmra.mrb[2].mxu1 %vm63_vm7, %v5323_v63  ;;  %v5064_v58 = vpack.c.bf16 %v176_v48, %v175_v47  ;;  %v5066_v62 = vpack.c.bf16 %v194_v55, %v193_v53  ;;  %v5098_v0 = vpack.c.bf16 %v226_v57, %v225_v56  ;;  %vm2250_vm5 = vcmask 523264  }
  0x89   :  { %5049 = vmatpush3.bf16.msra.mxu0 %v5048_v5  ;;  %5081 = vmatpush3.bf16.msra.mxu1 %v5080_v6  ;;  %v196_v5 = vld [vmem:[%s6447_s1 + $0x2f8] sm:$0xff]  ;;  %v227_v6 = vld [vmem:[%s6447_s1 + $0x3f0] sm:$0xff]  ;;  %vm66_vm12 = vcmp.eq.s32.totalorder %v5676_v7, %v5673_v4  ;;  %vm68_vm13 = vcmp.eq.s32.totalorder %v5679_v8, %v5673_v4  ;;  %vm67_vm15 = vcmp.eq.s32.totalorder %v45_v21, %v5673_v4  ;;  %vm4205_vm6 = vcmask 1041409  }
  0x8a   :  { %4330 = vmatprep.mubr.msk.f32.mxu0 %vm58_vm8, %v5323_v63  ;;  %4334 = vmatprep.mubr.msk.f32.mxu1 %vm60_vm9, %v5323_v63  ;;  %v5070_v13 = vpack.c.bf16 %v196_v5, %v195_v3  ;;  %v569_v8 = vld [vmem:[%s6449_s3 + $0x10] sm:$0xff]  ;;  %v540_v52 = vcombine.high %v4338_v43, %v4338_v43  ;;  %vm4279_vm7 = vcmask 33792  }
  0x8b   :  { %5051 = vmatprep.subr.bf16.mxu0 %v5050_v14  ;;  %5083 = vmatprep.subr.bf16.mxu1 %v5082_v15  ;;  %v5102_v14 = vpack.c.bf16 %v228_v9, %v227_v6  ;;  %v180_v15 = vld [vmem:[%s6447_s1 + $0x278] sm:$0xff]  ;;  %s5338_s1 = smov 8  }
  0x8c   :  { %v5072_v18 = vpack.c.bf16 %v180_v15, %v179_v12 }
  0x8d   :  { %5053 = vmatpush3.bf16.msra.mxu0 %v5052_v19  ;;  %5085 = vmatpush3.bf16.msra.mxu1 %v5084_v20  ;;  %v5104_v19 = vpack.c.bf16 %v212_v17, %v211_v16  ;;  %v43_v20 = vadd.s32 512, %v5609_v42  ;;  %v567_v42 = vld [vmem:[%s6449_s3] sm:$0xff] }
  0x8e   :  { %5055 = vmatprep.subr.bf16.mxu0 %v5054_v23  ;;  %5087 = vmatprep.subr.bf16.mxu1 %v5086_v24 }
  0x8f   :  { %vm57_vm10 = vcmp.eq.s32.totalorder %v43_v20, %v5638_v54  ;;  %vm65_vm14 = vcmp.eq.s32.totalorder %v43_v20, %v5673_v4  ;;  %v568_v54 = vld [vmem:[%s6449_s3 + $0x8] sm:$0xff]  ;;  %v570_v4 = vld [vmem:[%s6449_s3 + $0x18] sm:$0xff] }
  0x90   :  { %v5106_v7 = vpack.c.bf16 %v568_v54, %v567_v42 }
  0x91   :  { %5057 = vmatpush3.bf16.msra.mxu0 %v5056_v31  ;;  %5089 = vmatpush3.bf16.msra.mxu1 %v5088_v32 }
  0x92   :  { %5059 = vmatprep.subr.bf16.mxu0 %v5058_v35  ;;  %5091 = vmatprep.subr.bf16.mxu1 %v5090_v36  ;;  %v5324_v36 = vmov 1966171168  }
  0x93   :  { %v542_v37 = vunpack.c.l.s4 %v5324_v36 }
  0x95   :  { %5061 = vmatpush3.bf16.msra.mxu0 %v5060_v45  ;;  %5093 = vmatpush3.bf16.msra.mxu1 %v5092_v46  ;;  %v543_v39 = vunpack.c.0.s8 %v542_v37 }
  0x96   :  { %5063 = vmatprep.subr.bf16.mxu0 %v5062_v49  ;;  %5095 = vmatprep.subr.bf16.mxu1 %v5094_v50  ;;  %v5864_v49 = vsub.s32 0, %v5857_v38 }
  0x97   :  { %v546_v40 = vsub.s32 %v543_v39, %v5857_v38 }
  0x99   :  { %5065 = vmatpush3.bf16.msra.mxu0 %v5064_v58  ;;  %5097 = vmatpush3.bf16.msra.mxu1 %v5096_v59  ;;  %v547_v48 = vrot.slane %v4338_v43, %v546_v40 }
  0x9a   :  { %5067 = vmatprep.subr.bf16.mxu0 %v5066_v62  ;;  %5099 = vmatprep.subr.bf16.mxu1 %v5098_v0  ;;  %v554_v62 = vrot.slane %v540_v52, %v546_v40 }
  0x9b   :  { %v558_v56 = vrot.slane %v547_v48, %v5864_v49 }
  0x9c   :  { %v562_v5 = vrot.slane %v554_v62, %v5864_v49 }
  0x9d   :  { %5069 = vmatpush3.bf16.msra.mxu0 %v5068_v10  ;;  %5101 = vmatpush3.bf16.msra.mxu1 %v5100_v11  ;;  %v5325_v10 = vmov 0.0   ;;  %v5885_v11 = vld [vmem:[%s6453_s7] sm:$0xff] }
  0x9e   :  { %5071 = vmatprep.subr.bf16.mxu0 %v5070_v13  ;;  %5103 = vmatprep.subr.bf16.mxu1 %v5102_v14  ;;  %v591_v12 = vrot.slane %v5885_v11, %v5864_v49 }
  0xa1   :  { %5073 = vmatpush3.bf16.msra.mxu0 %v5072_v18  ;;  %5105 = vmatpush3.bf16.msra.mxu1 %v5104_v19 }
  0xa2   :  { %5107 = vmatprep.subr.bf16.mxu0 %v5106_v7  ;;  %4714 = vmatprep.subr.mxu1 %v5325_v10 }
  0xa4   :  { %4331 = vmatmul.mubr.msk.f32.vlgmr.msra.gmra.mrb[4].mxu0 %vm57_vm10, %v5323_v63  ;;  %4335 = vmatmul.mubr.msk.f32.vlgmr.msra.gmra.mrb[4].mxu1 %vm59_vm11, %v5323_v63 }
  0xa5   :  { %4332 = vmatprep.mubr.msk.f32.mxu0 %vm66_vm12, %v5323_v63  ;;  %4336 = vmatprep.mubr.msk.f32.mxu1 %vm68_vm13, %v5323_v63 }
  0xa6   :  { %5109 = vmatpush3.bf16.msra.mxu0 %v5106_v7 }
  0xa8   :  { %4333 = vmatmul.mubr.msk.f32.gmra.mrb[6].mxu0 %vm65_vm14, %v5323_v63  ;;  %4337 = vmatmul.mubr.msk.f32.gmra.mrb[6].mxu1 %vm67_vm15, %v5323_v63  ;;  %v5110_v63 = vpack.c.bf16 %v570_v4, %v569_v8 }
  0xa9   :  { %4716 = vmatprep.mubr.msk.f32.mxu1 %vm5326_vm1, %v5325_v10 }
  0xaa   :  { %5111 = vmatprep.subr.bf16.mxu0 %v5110_v63 }
  0xab   :  { %5113 = vmatpush3.bf16.msra.mxu0 %v5110_v63 }
  0xac   :  { %4719 = vmatprep.subr.mxu0 %v5325_v10 }
 0x157   :  { %v4458_v22 = vpop.f32.mrb[0].mxu0  ;;  %v4496_v23 = vpop.f32.mrb[0].mxu1 }
 0x158   :  { %v4459_v24 = vpop.f32.mrb[1].mxu0  ;;  %v4497_v25 = vpop.f32.mrb[1].mxu1 }
 0x159   :  { %v4460_v26 = vadd.f32 %v4459_v24, %v4458_v22  ;;  %v4498_v27 = vadd.f32 %v4497_v25, %v4496_v23 }
 0x15b   :  { %v371_v28 = vadd.f32 %v4498_v27, %v4460_v26  ;;  %v4461_v29 = vpop.f32.mrb[2].mxu0  ;;  %v4499_v30 = vpop.f32.mrb[2].mxu1 }
 0x15c   :  { %v4462_v31 = vpop.f32.mrb[3].mxu0  ;;  %v4500_v32 = vpop.f32.mrb[3].mxu1 }
 0x15d   :  { %v4463_v33 = vadd.f32 %v4462_v31, %v4461_v29  ;;  %v4501_v34 = vadd.f32 %v4500_v32, %v4499_v30 }
 0x15f   :  { %v376_v35 = vadd.f32 %v4501_v34, %v4463_v33 }
 0x177   :  { %v4534_v44 = vpop.f32.mrb[4].mxu0  ;;  %v4572_v45 = vpop.f32.mrb[4].mxu1 }
 0x178   :  { %v4535_v46 = vpop.f32.mrb[5].mxu0  ;;  %v4573_v47 = vpop.f32.mrb[5].mxu1 }
 0x179   :  { %v4536_v50 = vadd.f32 %v4535_v46, %v4534_v44  ;;  %v4574_v51 = vadd.f32 %v4573_v47, %v4572_v45 }
 0x17b   :  { %v446_v41 = vadd.f32 %v4536_v50, %v371_v28  ;;  %v4537_v53 = vpop.f32.mrb[6].mxu0  ;;  %v4575_v55 = vpop.f32.mrb[6].mxu1 }
 0x17c   :  { %v4538_v57 = vpop.f32.mrb[7].mxu0  ;;  %v4576_v58 = vpop.f32.mrb[7].mxu1 }
 0x17d   :  { %v521_v59 = vadd.f32 %v4574_v51, %v446_v41  ;;  %v4539_v60 = vadd.f32 %v4538_v57, %v4537_v53  ;;  %v4577_v61 = vadd.f32 %v4576_v58, %v4575_v55 }
 0x17f   :  { %v529_v0 = vmul.f32 5.656854, %v521_v59  ;;  %v451_v1 = vadd.f32 %v4539_v60, %v376_v35 }
 0x181   :  { %v5867_v2 = vadd.f32 %v558_v56, %v529_v0  ;;  %v526_v3 = vadd.f32 %v4577_v61, %v451_v1 }
 0x183   :  { %v530_v6 = vmul.f32 5.656854, %v526_v3  ;;  %4711 = vmatprep.mubr.msk.f32.mxu0 %vm592_vm0, %v5867_v2 }
 0x185   :  { %v5872_v9 = vadd.f32 %v562_v5, %v530_v6 }
 0x187   :  { %4712 = vmatmul.mubr.msk.f32.vlgmr.msra.gmra.mrb[8].mxu0 %vm592_vm0, %v5872_v9 }
 0x188   :  { %4721 = vmatprep.mubr.msk.f32.mxu0 %vm5326_vm1, %v5325_v10 }
 0x25a   :  { %v4713_v13 = vpop.f32.mrb[8].mxu0 }
 0x25b   :  { %v665_v14 = vpop.f32.mrb[9].mxu0  ;;  %v5893_v16 = vadd.f32 %v4713_v13, %v591_v12 }
 0x25c   :  { %v5889_v15 = vadd.f32 %v665_v14, %v591_v12 }
 0x25e   :  { %675 = vrot.lane.b32.xlu1 %v5889_v15, %s5327_s30 }
 0x262   :  { %753 = vrot.lane.b32.xlu1 %v5893_v16, %s5327_s30 }
 0x2d0   :  { %v676_v17 = vpop.permute.xlu1 %675 }
 0x2d1   :  { %4715 = vmatpush3.xpose.msk.msra.mxu1 %vm677_vm2, %v676_v17 }
 0x2d2   :  { %4724 = vmatprep.subr.mxu1 %v5325_v10 }
 0x2d4   :  { %4717 = vmatmul.mubr.msk.f32.vlgmr.msra.gmra.mrb[8].mxu1 %vm677_vm2, %v5889_v15  ;;  %v754_v18 = vpop.permute.xlu1 %753 }
 0x2d5   :  { %4720 = vmatpush3.xpose.msk.msra.mxu0 %vm677_vm2, %v754_v18  ;;  %4726 = vmatprep.mubr.msk.f32.mxu1 %vm5326_vm1, %v5325_v10 }
 0x2d6   :  { %4729 = vmatprep.subr.mxu0 %v5325_v10 }
 0x2d8   :  { %4722 = vmatmul.mubr.msk.f32.vlgmr.msra.gmra.mrb[10].mxu0 %vm677_vm2, %v5893_v16 }
 0x2d9   :  { %4731 = vmatprep.mubr.msk.f32.mxu0 %vm5326_vm1, %v5325_v10 }
 0x3a7   :  { %v748_v19 = vpop.f32.mrb[8].mxu1 }
 0x3a8   :  { %v829_v20 = vmul.f32 0.35355338, %v748_v19  ;;  %v4718_v21 = vpop.f32.mrb[9].mxu1 }
 0x3aa   :  { %v831_v42 = vsel %vm677_vm2, %v829_v20, -inf }
 0x3ab   :  { %832 = vmax.xlane.f32.xlu0 %v831_v42  ;;  %v825_v54 = vpop.f32.mrb[10].mxu0 }
 0x3ac   :  { %v830_v7 = vmul.f32 0.35355338, %v825_v54  ;;  %v4723_v8 = vpop.f32.mrb[11].mxu0 }
 0x3ae   :  { %v834_v4 = vsel %vm677_vm2, %v830_v7, -inf }
 0x3af   :  { %835 = vmax.xlane.f32.xlu1 %v834_v4 }
 0x3c0   :  { %853 = vrot.lane.b32.xlu1 %v5889_v15, %s5328_s11 }
 0x3c1   :  { %929 = vrot.lane.b32.xlu0 %v5893_v16, %s5328_s11 }
 0x3c4   :  { %1007 = vrot.lane.b32.xlu1 %v5889_v15, %s5329_s12 }
 0x3c8   :  { %1085 = vrot.lane.b32.xlu1 %v5893_v16, %s5329_s12 }
 0x3cc   :  { %1083 = vrot.lane.b32.xlu1 %v5893_v16, %s5330_s13 }
 0x438   :  { %v833_v63 = vpop.xlane.xlu0 %832 }
 0x439   :  { %v837_v22 = vsub.f32 %v829_v20, %v833_v63 }
 0x43b   :  { %v839_v26 = vmul.f32 1.442695, %v837_v22 }
 0x43c   :  { %v930_v23 = vpop.permute.xlu0 %929  ;;  %v836_v24 = vpop.xlane.xlu1 %835 }
 0x43d   :  { %v838_v25 = vsub.f32 %v830_v7, %v836_v24  ;;  %4730 = vmatpush3.msra.mxu0 %v930_v23 }
 0x43e   :  { %4739 = vmatprep.subr.mxu0 %v5325_v10 }
 0x43f   :  { %v841_v27 = vmul.f32 1.442695, %v838_v25 }
 0x440   :  { %v854_v28 = vpop.permute.xlu1 %853 }
 0x441   :  { %5214 = vpow2.f32 %v841_v27  ;;  %4725 = vmatpush3.msra.mxu1 %v854_v28 }
 0x442   :  { %4734 = vmatprep.subr.mxu1 %v5325_v10  ;;  %5216 = vpow2.f32 %v839_v26 }
 0x444   :  { %v1008_v35 = vpop.permute.xlu1 %1007 }
 0x448   :  { %v1086_v37 = vpop.permute.xlu1 %1085 }
 0x44b   :  { %v5215_v29 = vpop.eup %5214 }
 0x44c   :  { %v846_v30 = vsel %vm677_vm2, %v5215_v29, 0.0  ;;  %v5217_v31 = vpop.eup %5216  ;;  %v1084_v44 = vpop.permute.xlu1 %1083 }
 0x44d   :  { %847 = vadd.xlane.f32.xlu0 %v846_v30  ;;  %v843_v32 = vsel %vm677_vm2, %v5217_v31, 0.0 }
 0x451   :  { %844 = vadd.xlane.f32.xlu0 %v843_v32 }
 0x467   :  { %1005 = vrot.lane.b32.xlu0 %v5889_v15, %s5330_s13 }
 0x4da   :  { %v848_v33 = vpop.xlane.xlu0 %847 }
 0x4db   :  { %5218 = vrcp.f32 %v848_v33 }
 0x4de   :  { %v845_v34 = vpop.xlane.xlu0 %844 }
 0x4df   :  { %5220 = vrcp.f32 %v845_v34 }
 0x4e2   :  { %v1006_v45 = vpop.permute.xlu0 %1005 }
 0x4e5   :  { %v5219_v36 = vpop.eup %5218 }
 0x4e6   :  { %v852_v39 = vmul.f32 %v5219_v36, %v5215_v29 }
 0x4e8   :  { %4732 = vmatmul.mubr.msk.f32.vlgmr.msra.gmra.mrb[12].mxu0 %vm677_vm2, %v852_v39 }
 0x4e9   :  { %v5221_v40 = vpop.eup %5220  ;;  %4740 = vmatpush3.xpose.msk.msra.mxu0 %vm677_vm2, %v1086_v37  ;;  %4741 = vmatprep.mubr.msk.f32.mxu0 %vm5326_vm1, %v5325_v10 }
 0x4ea   :  { %v851_v43 = vmul.f32 %v5221_v40, %v5217_v31  ;;  %4749 = vmatprep.subr.mxu0 %v5325_v10 }
 0x4ec   :  { %4727 = vmatmul.mubr.msk.f32.vlgmr.msra.gmra.mrb[10].mxu1 %vm677_vm2, %v851_v43  ;;  %4742 = vmatmul.mubr.msk.f32.vlgmr.msra.gmra.mrb[14].mxu0 %vm677_vm2, %v1084_v44 }
 0x4ed   :  { %4735 = vmatpush3.xpose.msk.msra.mxu1 %vm677_vm2, %v1008_v35  ;;  %4736 = vmatprep.mubr.msk.f32.mxu1 %vm5326_vm1, %v5325_v10 }
 0x4ee   :  { %4744 = vmatprep.subr.mxu1 %v5325_v10  ;;  %4751 = vmatprep.mubr.msk.f32.mxu0 %vm5326_vm1, %v5325_v10 }
 0x4f0   :  { %4737 = vmatmul.mubr.msk.f32.vlgmr.msra.gmra.mrb[12].mxu1 %vm677_vm2, %v1006_v45 }
 0x4f1   :  { %4746 = vmatprep.mubr.msk.f32.mxu1 %vm5326_vm1, %v5325_v10 }
 0x5bb   :  { %v5943_v46 = vpop.f32.mrb[12].mxu0 }
 0x5bc   :  { %v4733_v47 = vpop.f32.mrb[13].mxu0 }
 0x5bf   :  { %v5945_v48 = vpop.f32.mrb[10].mxu1  ;;  %v1157_v50 = vpop.f32.mrb[14].mxu0 }
 0x5c0   :  { %v1162_v51 = vmul.f32 0.35355338, %v1157_v50  ;;  %v4728_v52 = vpop.f32.mrb[11].mxu1  ;;  %v4743_v41 = vpop.f32.mrb[15].mxu0 }
 0x5c2   :  { %v1166_v53 = vsel %vm677_vm2, %v1162_v51, -inf }
 0x5c3   :  { %v1079_v55 = vpop.f32.mrb[12].mxu1  ;;  %1167 = vmax.xlane.f32.xlu1 %v1166_v53 }
 0x5c4   :  { %v1161_v56 = vmul.f32 0.35355338, %v1079_v55  ;;  %v4738_v57 = vpop.f32.mrb[13].mxu1 }
 0x5c6   :  { %v1163_v58 = vsel %vm677_vm2, %v1161_v56, -inf }
 0x5c7   :  { %1164 = vmax.xlane.f32.xlu0 %v1163_v58 }
 0x5d4   :  { %1185 = vrot.lane.b32.xlu1 %v5889_v15, %s5331_s14 }
 0x5d8   :  { %1339 = vrot.lane.b32.xlu1 %v5889_v15, %s5332_s15 }
 0x5dc   :  { %1417 = vrot.lane.b32.xlu1 %v5893_v16, %s5332_s15 }
 0x5dd   :  { %1261 = vrot.lane.b32.xlu0 %v5893_v16, %s5331_s14 }
 0x5e0   :  { %1415 = vrot.lane.b32.xlu1 %v5893_v16, %s5333_s16 }
 0x650   :  { %v1168_v59 = vpop.xlane.xlu1 %1167 }
 0x651   :  { %v1170_v60 = vsub.f32 %v1162_v51, %v1168_v59 }
 0x653   :  { %v1173_v61 = vmul.f32 1.442695, %v1170_v60 }
 0x654   :  { %v1165_v62 = vpop.xlane.xlu0 %1164  ;;  %v1186_v0 = vpop.permute.xlu1 %1185 }
 0x655   :  { %5222 = vpow2.f32 %v1173_v61  ;;  %v1169_v1 = vsub.f32 %v1161_v56, %v1165_v62  ;;  %4745 = vmatpush3.msra.mxu1 %v1186_v0 }
 0x656   :  { %4754 = vmatprep.subr.mxu1 %v5325_v10 }
 0x657   :  { %v1171_v3 = vmul.f32 1.442695, %v1169_v1 }
 0x658   :  { %v1262_v5 = vpop.permute.xlu0 %1261  ;;  %v1340_v19 = vpop.permute.xlu1 %1339 }
 0x659   :  { %5224 = vpow2.f32 %v1171_v3  ;;  %4750 = vmatpush3.msra.mxu0 %v1262_v5 }
 0x65a   :  { %4759 = vmatprep.subr.mxu0 %v5325_v10 }
 0x65c   :  { %v1418_v21 = vpop.permute.xlu1 %1417 }
 0x65f   :  { %v5223_v6 = vpop.eup %5222 }
 0x660   :  { %v1178_v12 = vsel %vm677_vm2, %v5223_v6, 0.0  ;;  %v1416_v8 = vpop.permute.xlu1 %1415 }
 0x661   :  { %1179 = vadd.xlane.f32.xlu0 %v1178_v12 }
 0x663   :  { %v5225_v13 = vpop.eup %5224 }
 0x664   :  { %v1175_v14 = vsel %vm677_vm2, %v5225_v13, 0.0 }
 0x665   :  { %1176 = vadd.xlane.f32.xlu0 %v1175_v14 }
 0x67b   :  { %1337 = vrot.lane.b32.xlu0 %v5889_v15, %s5333_s16 }
 0x6ee   :  { %v1180_v17 = vpop.xlane.xlu0 %1179 }
 0x6ef   :  { %5226 = vrcp.f32 %v1180_v17 }
 0x6f2   :  { %v1177_v18 = vpop.xlane.xlu0 %1176 }
 0x6f3   :  { %5228 = vrcp.f32 %v1177_v18 }
 0x6f6   :  { %v1338_v4 = vpop.permute.xlu0 %1337 }
 0x6f9   :  { %v5227_v20 = vpop.eup %5226 }
 0x6fa   :  { %v1184_v42 = vmul.f32 %v5227_v20, %v5223_v6 }
 0x6fc   :  { %4752 = vmatmul.mubr.msk.f32.vlgmr.msra.gmra.mrb[16].mxu0 %vm677_vm2, %v1184_v42 }
 0x6fd   :  { %v5229_v54 = vpop.eup %5228  ;;  %4760 = vmatpush3.xpose.msk.msra.mxu0 %vm677_vm2, %v1418_v21  ;;  %4761 = vmatprep.mubr.msk.f32.mxu0 %vm5326_vm1, %v5325_v10 }
 0x6fe   :  { %v1183_v7 = vmul.f32 %v5229_v54, %v5225_v13  ;;  %4769 = vmatprep.subr.mxu0 %v5325_v10 }
 0x700   :  { %4747 = vmatmul.mubr.msk.f32.vlgmr.msra.gmra.mrb[14].mxu1 %vm677_vm2, %v1183_v7  ;;  %4762 = vmatmul.mubr.msk.f32.vlgmr.msra.gmra.mrb[18].mxu0 %vm677_vm2, %v1416_v8 }
 0x701   :  { %4755 = vmatpush3.xpose.msk.msra.mxu1 %vm677_vm2, %v1340_v19  ;;  %4756 = vmatprep.mubr.msk.f32.mxu1 %vm5326_vm1, %v5325_v10 }
 0x702   :  { %4764 = vmatprep.subr.mxu1 %v5325_v10  ;;  %4771 = vmatprep.mubr.msk.f32.mxu0 %vm5326_vm1, %v5325_v10 }
 0x704   :  { %4757 = vmatmul.mubr.msk.f32.vlgmr.msra.gmra.mrb[16].mxu1 %vm677_vm2, %v1338_v4 }
 0x705   :  { %4766 = vmatprep.mubr.msk.f32.mxu1 %vm5326_vm1, %v5325_v10 }
 0x7cf   :  { %v5981_v63 = vpop.f32.mrb[16].mxu0 }
 0x7d0   :  { %v4753_v22 = vpop.f32.mrb[17].mxu0 }
 0x7d3   :  { %v5983_v23 = vpop.f32.mrb[14].mxu1  ;;  %v1489_v24 = vpop.f32.mrb[18].mxu0 }
 0x7d4   :  { %v1494_v25 = vmul.f32 0.35355338, %v1489_v24  ;;  %v4748_v26 = vpop.f32.mrb[15].mxu1  ;;  %v4763_v27 = vpop.f32.mrb[19].mxu0 }
 0x7d6   :  { %v1498_v28 = vsel %vm677_vm2, %v1494_v25, -inf }
 0x7d7   :  { %v1411_v29 = vpop.f32.mrb[16].mxu1  ;;  %1499 = vmax.xlane.f32.xlu1 %v1498_v28 }
 0x7d8   :  { %v1493_v30 = vmul.f32 0.35355338, %v1411_v29  ;;  %v4758_v31 = vpop.f32.mrb[17].mxu1 }
 0x7da   :  { %v1495_v32 = vsel %vm677_vm2, %v1493_v30, -inf }
 0x7db   :  { %1496 = vmax.xlane.f32.xlu0 %v1495_v32  ;;  %v573_v32 = vld [vmem:[%s6450_s4 + $0x10] sm:$0xff] }
 0x7e8   :  { %1517 = vrot.lane.b32.xlu1 %v5889_v15, %s5334_s17 }
 0x7ec   :  { %1671 = vrot.lane.b32.xlu1 %v5889_v15, %s5335_s18 }
 0x7f0   :  { %1749 = vrot.lane.b32.xlu1 %v5893_v16, %s5335_s18 }
 0x7f1   :  { %1593 = vrot.lane.b32.xlu0 %v5893_v16, %s5334_s17 }
 0x7f4   :  { %1747 = vrot.lane.b32.xlu1 %v5893_v16, %s5336_s19 }
 0x864   :  { %v1500_v33 = vpop.xlane.xlu1 %1499 }
 0x865   :  { %v1502_v34 = vsub.f32 %v1494_v25, %v1500_v33  ;;  %v574_v33 = vld [vmem:[%s6450_s4 + $0x18] sm:$0xff] }
 0x867   :  { %v1505_v35 = vmul.f32 1.442695, %v1502_v34  ;;  %v5118_v34 = vpack.c.bf16 %v574_v33, %v573_v32  ;;  %v2149_v32 = vsub.s32 4, %v5857_v38  ;;  %v2155_v33 = vsub.s32 5, %v5857_v38 }
 0x868   :  { %v1497_v36 = vpop.xlane.xlu0 %1496  ;;  %v1518_v37 = vpop.permute.xlu1 %1517 }
 0x869   :  { %5230 = vpow2.f32 %v1505_v35  ;;  %v1501_v39 = vsub.f32 %v1493_v30, %v1497_v36  ;;  %4765 = vmatpush3.msra.mxu1 %v1518_v37  ;;  %v572_v30 = vld [vmem:[%s6450_s4 + $0x8] sm:$0xff] }
 0x86a   :  { %4774 = vmatprep.subr.mxu1 %v5325_v10 }
 0x86b   :  { %v1503_v40 = vmul.f32 1.442695, %v1501_v39 }
 0x86c   :  { %v1594_v43 = vpop.permute.xlu0 %1593  ;;  %v1672_v41 = vpop.permute.xlu1 %1671 }
 0x86d   :  { %5232 = vpow2.f32 %v1503_v40  ;;  %4770 = vmatpush3.msra.mxu0 %v1594_v43 }
 0x86e   :  { %4779 = vmatprep.subr.mxu0 %v5325_v10 }
 0x870   :  { %v1750_v55 = vpop.permute.xlu1 %1749 }
 0x873   :  { %v5231_v44 = vpop.eup %5230 }
 0x874   :  { %v1510_v45 = vsel %vm677_vm2, %v5231_v44, 0.0  ;;  %v1748_v59 = vpop.permute.xlu1 %1747 }
 0x875   :  { %1511 = vadd.xlane.f32.xlu0 %v1510_v45 }
 0x877   :  { %v5233_v47 = vpop.eup %5232 }
 0x878   :  { %v1507_v50 = vsel %vm677_vm2, %v5233_v47, 0.0 }
 0x879   :  { %1508 = vadd.xlane.f32.xlu0 %v1507_v50 }
 0x88f   :  { %1669 = vrot.lane.b32.xlu0 %v5889_v15, %s5336_s19 }
 0x902   :  { %v1512_v51 = vpop.xlane.xlu0 %1511 }
 0x903   :  { %5234 = vrcp.f32 %v1512_v51 }
 0x906   :  { %v1509_v52 = vpop.xlane.xlu0 %1508 }
 0x907   :  { %5236 = vrcp.f32 %v1509_v52 }
 0x90a   :  { %v1670_v60 = vpop.permute.xlu0 %1669 }
 0x90d   :  { %v5235_v53 = vpop.eup %5234 }
 0x90e   :  { %v1516_v56 = vmul.f32 %v5235_v53, %v5231_v44 }
 0x910   :  { %4772 = vmatmul.mubr.msk.f32.vlgmr.msra.gmra.mrb[20].mxu0 %vm677_vm2, %v1516_v56 }
 0x911   :  { %v5237_v57 = vpop.eup %5236  ;;  %4780 = vmatpush3.xpose.msk.msra.mxu0 %vm677_vm2, %v1750_v55  ;;  %4781 = vmatprep.mubr.msk.f32.mxu0 %vm5326_vm1, %v5325_v10 }
 0x912   :  { %v1515_v58 = vmul.f32 %v5237_v57, %v5233_v47  ;;  %4789 = vmatprep.subr.mxu0 %v5325_v10 }
 0x914   :  { %4767 = vmatmul.mubr.msk.f32.vlgmr.msra.gmra.mrb[18].mxu1 %vm677_vm2, %v1515_v58  ;;  %4782 = vmatmul.mubr.msk.f32.vlgmr.msra.gmra.mrb[22].mxu0 %vm677_vm2, %v1748_v59 }
 0x915   :  { %4775 = vmatpush3.xpose.msk.msra.mxu1 %vm677_vm2, %v1672_v41  ;;  %4776 = vmatprep.mubr.msk.f32.mxu1 %vm5326_vm1, %v5325_v10 }
 0x916   :  { %4784 = vmatprep.subr.mxu1 %v5325_v10  ;;  %4791 = vmatprep.mubr.msk.f32.mxu0 %vm5326_vm1, %v5325_v10 }
 0x918   :  { %4777 = vmatmul.mubr.msk.f32.vlgmr.msra.gmra.mrb[20].mxu1 %vm677_vm2, %v1670_v60 }
 0x919   :  { %4786 = vmatprep.mubr.msk.f32.mxu1 %vm5326_vm1, %v5325_v10 }
 0x9e3   :  { %v1665_v61 = vpop.f32.mrb[20].mxu0 }
 0x9e4   :  { %v4773_v62 = vpop.f32.mrb[21].mxu0 }
 0x9e7   :  { %v1589_v0 = vpop.f32.mrb[18].mxu1  ;;  %v1821_v1 = vpop.f32.mrb[22].mxu0 }
 0x9e8   :  { %v1826_v3 = vmul.f32 0.35355338, %v1821_v1  ;;  %v4768_v5 = vpop.f32.mrb[19].mxu1  ;;  %v4783_v6 = vpop.f32.mrb[23].mxu0 }
 0x9ea   :  { %v1830_v12 = vsel %vm677_vm2, %v1826_v3, -inf }
 0x9eb   :  { %v1743_v13 = vpop.f32.mrb[20].mxu1  ;;  %1831 = vmax.xlane.f32.xlu1 %v1830_v12 }
 0x9ec   :  { %v1825_v14 = vmul.f32 0.35355338, %v1743_v13  ;;  %v4778_v17 = vpop.f32.mrb[21].mxu1 }
 0x9ee   :  { %v1827_v18 = vsel %vm677_vm2, %v1825_v14, -inf }
 0x9ef   :  { %1828 = vmax.xlane.f32.xlu0 %v1827_v18 }
 0x9fc   :  { %1849 = vrot.lane.b32.xlu1 %v5889_v15, %s5337_s20 }
 0xa00   :  { %2003 = vrot.lane.b32.xlu1 %v5983_v23, %s5338_s1 }
 0xa04   :  { %2005 = vrot.lane.b32.xlu1 %v5981_v63, %s5338_s1 }
 0xa08   :  { %2013 = vrot.lane.b32.xlu1 %v1665_v61, %s5339_s21 }
 0xa78   :  { %v1832_v19 = vpop.xlane.xlu1 %1831 }
 0xa79   :  { %v1834_v20 = vsub.f32 %v1826_v3, %v1832_v19 }
 0xa7b   :  { %v1837_v21 = vmul.f32 1.442695, %v1834_v20  ;;  %v576_v20 = vld [vmem:[%s6451_s5 + $0x8] sm:$0xff] }
 0xa7c   :  { %v1829_v42 = vpop.xlane.xlu0 %1828  ;;  %v1850_v54 = vpop.permute.xlu1 %1849 }
 0xa7d   :  { %5238 = vpow2.f32 %v1837_v21  ;;  %v1833_v7 = vsub.f32 %v1825_v14, %v1829_v42  ;;  %4785 = vmatpush3.msra.mxu1 %v1850_v54  ;;  %v577_v42 = vld [vmem:[%s6451_s5 + $0x10] sm:$0xff]  ;;  %v578_v54 = vld [vmem:[%s6451_s5 + $0x18] sm:$0xff] }
 0xa7f   :  { %v1835_v8 = vmul.f32 1.442695, %v1833_v7  ;;  %v5126_v7 = vpack.c.bf16 %v578_v54, %v577_v42 }
 0xa80   :  { %v2004_v40 = vpop.permute.xlu1 %2003 }
 0xa81   :  { %5240 = vpow2.f32 %v1835_v8  ;;  %v2025_v47 = vsel %vm677_vm2, %v5945_v48, %v2004_v40  ;;  %v2035_v48 = vsub.s32 1, %v5857_v38  ;;  %v579_v8 = vld [vmem:[%s6452_s6] sm:$0xff] }
 0xa83   :  { %v2036_v57 = vrot.slane %v5885_v11, %v2035_v48 }
 0xa84   :  { %v2006_v43 = vpop.permute.xlu1 %2005 }
 0xa85   :  { %v2026_v51 = vsel %vm677_vm2, %v5943_v46, %v2006_v43 }
 0xa87   :  { %v5239_v15 = vpop.eup %5238 }
 0xa88   :  { %v1842_v4 = vsel %vm677_vm2, %v5239_v15, 0.0  ;;  %v2014_v44 = vpop.permute.xlu1 %2013 }
 0xa89   :  { %1843 = vadd.xlane.f32.xlu0 %v1842_v4  ;;  %v2029_v53 = vsel %vm2027_vm3, %v2026_v51, %v2014_v44  ;;  %v581_v4 = vld [vmem:[%s6452_s6 + $0x10] sm:$0xff]  ;;  %v586_v51 = vld [vmem:[%s6452_s6 + $0x38] sm:$0xff] }
 0xa8b   :  { %v5241_v22 = vpop.eup %5240 }
 0xa8c   :  { %v1839_v63 = vsel %vm677_vm2, %v5241_v22, 0.0 }
 0xa8d   :  { %1840 = vadd.xlane.f32.xlu0 %v1839_v63  ;;  %v582_v63 = vld [vmem:[%s6452_s6 + $0x18] sm:$0xff] }
 0xaa3   :  { %1925 = vrot.lane.b32.xlu0 %v5893_v16, %s5337_s20  ;;  %v571_v16 = vld [vmem:[%s6450_s4] sm:$0xff] }
 0xaa4   :  { %v5114_v31 = vpack.c.bf16 %v572_v30, %v571_v16 }
 0xaa6   :  { %5115 = vmatprep.subr.bf16.mxu1 %v5114_v31 }
 0xaa7   :  { %2011 = vrot.lane.b32.xlu0 %v1589_v0, %s5339_s21 }
 0xb16   :  { %v1844_v23 = vpop.xlane.xlu0 %1843 }
 0xb17   :  { %5242 = vrcp.f32 %v1844_v23  ;;  %v5134_v23 = vpack.c.bf16 %v582_v63, %v581_v4  ;;  %v4373_v4 = vld [vmem:[%s6449_s3 + $0x30] sm:$0xff] }
 0xb1a   :  { %v1841_v24 = vpop.xlane.xlu0 %1840 }
 0xb1b   :  { %5244 = vrcp.f32 %v1841_v24  ;;  %v583_v24 = vld [vmem:[%s6452_s6 + $0x20] sm:$0xff] }
 0xb1e   :  { %v1926_v25 = vpop.permute.xlu0 %1925 }
 0xb1f   :  { %4790 = vmatpush3.msra.mxu0 %v1926_v25  ;;  %v584_v25 = vld [vmem:[%s6452_s6 + $0x28] sm:$0xff] }
 0xb21   :  { %v5243_v26 = vpop.eup %5242 }
 0xb22   :  { %v1848_v27 = vmul.f32 %v5243_v26, %v5239_v15  ;;  %v2012_v45 = vpop.permute.xlu0 %2011  ;;  %v580_v15 = vld [vmem:[%s6452_s6 + $0x8] sm:$0xff]  ;;  %v5138_v26 = vpack.c.bf16 %v584_v25, %v583_v24 }
 0xb23   :  { %v2028_v52 = vsel %vm2027_vm3, %v2025_v47, %v2012_v45 }
 0xb24   :  { %4792 = vmatmul.mubr.msk.f32.vlgmr.msra.gmra.mrb[24].mxu0 %vm677_vm2, %v1848_v27 }
 0xb25   :  { %v5245_v28 = vpop.eup %5244 }
 0xb26   :  { %v1847_v29 = vmul.f32 %v5245_v28, %v5241_v22  ;;  %v5130_v22 = vpack.c.bf16 %v580_v15, %v579_v8  ;;  %v4372_v8 = vld [vmem:[%s6449_s3 + $0x28] sm:$0xff] }
 0xb28   :  { %4787 = vmatmul.mubr.msk.f32.vlgmr.msra.gmra.mrb[22].mxu1 %vm677_vm2, %v1847_v29 }
 0xb29   :  { %5117 = vmatpush3.bf16.msra.mxu1 %v5114_v31 }
 0xb2a   :  { %5119 = vmatprep.subr.bf16.mxu1 %v5118_v34 }
 0xb2d   :  { %5121 = vmatpush3.bf16.msra.mxu1 %v5118_v34  ;;  %v2150_v34 = vrot.slane %v5885_v11, %v2149_v32 }
 0xb2e   :  { %5131 = vmatprep.subr.bf16.mxu1 %v5130_v22 }
 0xbf7   :  { %v1997_v35 = vpop.f32.mrb[24].mxu0 }
 0xbf8   :  { %2021 = vrot.lane.b32.xlu1 %v1997_v35, %s6457_s2  ;;  %v4793_v36 = vpop.f32.mrb[25].mxu0 }
 0xbfb   :  { %v1921_v37 = vpop.f32.mrb[22].mxu1 }
 0xbfc   :  { %2019 = vrot.lane.b32.xlu0 %v1921_v37, %s6457_s2  ;;  %v4788_v39 = vpop.f32.mrb[23].mxu1  ;;  %v2156_v37 = vrot.slane %v5885_v11, %v2155_v33 }
 0xc6a   :  { %v2022_v50 = vpop.permute.xlu1 %2021 }
 0xc6b   :  { %v2032_v56 = vsel %vm2030_vm4, %v2029_v53, %v2022_v50  ;;  %v585_v50 = vld [vmem:[%s6452_s6 + $0x30] sm:$0xff] }
 0xc6e   :  { %v2020_v41 = vpop.permute.xlu0 %2019 }
 0xc6f   :  { %v2031_v55 = vsel %vm2030_vm4, %v2028_v52, %v2020_v41  ;;  %v5142_v52 = vpack.c.bf16 %v586_v51, %v585_v50  ;;  %v2161_v41 = vsub.s32 2, %v5857_v38 }
 0xc70   :  { %4802 = vmatprep.mubr.msk.f32.mxu1 %vm592_vm0, %v2031_v55 }
 0xc71   :  { %4803 = vmatmul.mubr.msk.f32.vlgmr.msra.gmra.mrb[24].mxu1 %vm592_vm0, %v2032_v56  ;;  %v2162_v53 = vrot.slane %v5885_v11, %v2161_v41 }
 0xc72   :  { %5133 = vmatpush3.bf16.msra.mxu1 %v5130_v22  ;;  %v4374_v22 = vld [vmem:[%s6449_s3 + $0x38] sm:$0xff] }
 0xc73   :  { %5135 = vmatprep.subr.bf16.mxu1 %v5134_v23  ;;  %v5150_v63 = vpack.c.bf16 %v4374_v22, %v4373_v4 }
 0xc76   :  { %5137 = vmatpush3.bf16.msra.mxu1 %v5134_v23 }
 0xc77   :  { %5139 = vmatprep.subr.bf16.mxu1 %v5138_v26 }
 0xc7a   :  { %5141 = vmatpush3.bf16.msra.mxu1 %v5138_v26 }
 0xc7b   :  { %5143 = vmatprep.subr.bf16.mxu1 %v5142_v52 }
 0xc7e   :  { %5145 = vmatpush3.bf16.msra.mxu1 %v5142_v52 }
 0xc7f   :  { %4856 = vmatprep.subr.mxu1 %v5325_v10 }
 0xd44   :  { %v4804_v46 = vpop.f32.mrb[24].mxu1 }
 0xd45   :  { %v2115_v58 = vadd.f32 %v4804_v46, %v2036_v57  ;;  %v2109_v59 = vpop.f32.mrb[25].mxu1 }
 0xd46   :  { %v2110_v60 = vadd.f32 %v2109_v59, %v2036_v57 }
 0xd47   :  { %v2119_v61 = vadd.f32 %v2115_v58, %v5872_v9 }
 0xd48   :  { %v2118_v62 = vadd.f32 %v2110_v60, %v5867_v2  ;;  %v575_v2 = vld [vmem:[%s6451_s5] sm:$0xff]  ;;  %v2248_v60 = vsub.s32 3, %v5857_v38 }
 0xd49   :  { %v2123_v0 = vsel %vm592_vm0, %v2119_v61, 0.0  ;;  %v5122_v21 = vpack.c.bf16 %v576_v20, %v575_v2 }
 0xd4a   :  { %2124 = vadd.xlane.f32.xlu1 %v2123_v0  ;;  %v2120_v1 = vsel %vm592_vm0, %v2118_v62, 0.0 }
 0xd4b   :  { %2121 = vadd.xlane.f32.xlu0 %v2120_v1  ;;  %5123 = vmatprep.subr.bf16.mxu0 %v5122_v21 }
 0xd4c   :  { %5125 = vmatpush3.bf16.msra.mxu0 %v5122_v21 }
 0xd4d   :  { %5127 = vmatprep.subr.bf16.mxu0 %v5126_v7 }
 0xd50   :  { %5129 = vmatpush3.bf16.msra.mxu0 %v5126_v7  ;;  %v4371_v7 = vld [vmem:[%s6449_s3 + $0x20] sm:$0xff] }
 0xd51   :  { %v5146_v15 = vpack.c.bf16 %v4372_v8, %v4371_v7 }
 0xd53   :  { %5147 = vmatprep.subr.bf16.mxu0 %v5146_v15 }
 0xdd7   :  { %v2125_v3 = vpop.xlane.xlu1 %2124 }
 0xdd8   :  { %v2128_v5 = vmul.f32 0.03125, %v2125_v3  ;;  %v2122_v6 = vpop.xlane.xlu0 %2121 }
 0xdd9   :  { %v2127_v12 = vmul.f32 0.03125, %v2122_v6 }
 0xdda   :  { %v2130_v13 = vsub.f32 %v2119_v61, %v2128_v5  ;;  %v2249_v61 = vrot.slane %v5885_v11, %v2248_v60 }
 0xddb   :  { %v2129_v14 = vsub.f32 %v2118_v62, %v2127_v12 }
 0xddc   :  { %v2132_v19 = vmul.f32 %v2130_v13, %v2130_v13 }
 0xddd   :  { %v2131_v17 = vmul.f32 %v2129_v14, %v2129_v14 }
 0xdde   :  { %v2136_v9 = vsel %vm592_vm0, %v2132_v19, 0.0 }
 0xddf   :  { %v2133_v18 = vsel %vm592_vm0, %v2131_v17, 0.0 }
 0xde0   :  { %2134 = vadd.xlane.f32.xlu0 %v2133_v18 }
 0xde4   :  { %2137 = vadd.xlane.f32.xlu0 %v2136_v9 }
 0xe6d   :  { %v2135_v27 = vpop.xlane.xlu0 %2134 }
 0xe6e   :  { %v2139_v28 = vmul.f32 0.03125, %v2135_v27 }
 0xe70   :  { %v2141_v29 = vadd.f32 1e-05, %v2139_v28 }
 0xe71   :  { %v2138_v16 = vpop.xlane.xlu0 %2137 }
 0xe72   :  { %5246 = vrsqrt.f32 %v2141_v29  ;;  %v2140_v30 = vmul.f32 0.03125, %v2138_v16  ;;  %v2362_v29 = vsub.s32 6, %v5857_v38  ;;  %v2368_v16 = vsub.s32 7, %v5857_v38 }
 0xe74   :  { %v2142_v31 = vadd.f32 1e-05, %v2140_v30  ;;  %v2363_v30 = vrot.slane %v5885_v11, %v2362_v29 }
 0xe76   :  { %5248 = vrsqrt.f32 %v2142_v31 }
 0xe7c   :  { %v5247_v35 = vpop.eup %5246 }
 0xe7d   :  { %v2145_v36 = vmul.f32 %v5247_v35, %v2129_v14 }
 0xe7f   :  { %v2151_v39 = vmul.f32 %v2150_v34, %v2145_v36 }
 0xe80   :  { %v5249_v40 = vpop.eup %5248 }
 0xe81   :  { %v2146_v43 = vmul.f32 %v5249_v40, %v2130_v13  ;;  %v2157_v44 = vadd.f32 %v2156_v37, %v2151_v39 }
 0xe83   :  { %v2152_v45 = vmul.f32 %v2150_v34, %v2146_v43  ;;  %4813 = vmatprep.mubr.msk.f32.mxu0 %vm592_vm0, %v2157_v44 }
 0xe85   :  { %v2158_v47 = vadd.f32 %v2156_v37, %v2152_v45  ;;  %v2369_v37 = vrot.slane %v5885_v11, %v2368_v16  ;;  %v6166_v45 = vld [vmem:[%s6453_s7 + $0x8] sm:$0xff] }
 0xe86   :  { %v2401_v11 = vrot.slane %v6166_v45, %v5864_v49 }
 0xe87   :  { %4814 = vmatmul.mubr.msk.f32.vlgmr.msra.gmra.mrb[26].mxu0 %vm592_vm0, %v2158_v47 }
 0xe88   :  { %5149 = vmatpush3.bf16.msra.mxu0 %v5146_v15 }
 0xe89   :  { %5151 = vmatprep.subr.bf16.mxu0 %v5150_v63 }
 0xe8c   :  { %5153 = vmatpush3.bf16.msra.mxu0 %v5150_v63 }
 0xe8d   :  { %4846 = vmatprep.subr.mxu0 %v5325_v10 }
 0xf5a   :  { %v4815_v55 = vpop.f32.mrb[26].mxu0 }
 0xf5b   :  { %v2241_v56 = vadd.f32 %v4815_v55, %v2162_v53  ;;  %v2235_v57 = vpop.f32.mrb[27].mxu0 }
 0xf5c   :  { %v2236_v46 = vadd.f32 %v2235_v57, %v2162_v53 }
 0xf5d   :  { %v2245_v59 = vmax.f32 %v2241_v56, 0.0 }
 0xf5e   :  { %v2244_v58 = vmax.f32 %v2236_v46, 0.0 }
 0xf60   :  { %4832 = vmatprep.mubr.msk.f32.mxu1 %vm2250_vm5, %v2244_v58 }
 0xf61   :  { %4833 = vmatmul.mubr.msk.f32.vlgmr.msra.gmra.mrb[26].mxu1 %vm2250_vm5, %v2245_v59 }
 0xf62   :  { %4858 = vmatprep.mubr.msk.f32.mxu1 %vm5326_vm1, %v5325_v10 }
0x1034   :  { %v4834_v62 = vpop.f32.mrb[26].mxu1 }
0x1035   :  { %v2329_v0 = vadd.f32 %v4834_v62, %v2249_v61  ;;  %v2323_v1 = vpop.f32.mrb[27].mxu1 }
0x1036   :  { %v2324_v3 = vadd.f32 %v2323_v1, %v2249_v61 }
0x1037   :  { %v2333_v5 = vadd.f32 %v2329_v0, %v2158_v47 }
0x1038   :  { %v2332_v6 = vadd.f32 %v2324_v3, %v2157_v44 }
0x1039   :  { %v2337_v12 = vsel %vm592_vm0, %v2333_v5, 0.0 }
0x103a   :  { %2338 = vadd.xlane.f32.xlu0 %v2337_v12  ;;  %v2334_v13 = vsel %vm592_vm0, %v2332_v6, 0.0 }
0x103b   :  { %2335 = vadd.xlane.f32.xlu1 %v2334_v13 }
0x10c7   :  { %v2339_v14 = vpop.xlane.xlu0 %2338 }
0x10c8   :  { %v2341_v17 = vmul.f32 0.03125, %v2339_v14  ;;  %v2336_v18 = vpop.xlane.xlu1 %2335 }
0x10c9   :  { %v2340_v19 = vmul.f32 0.03125, %v2336_v18 }
0x10ca   :  { %v2343_v9 = vsub.f32 %v2333_v5, %v2341_v17 }
0x10cb   :  { %v2342_v2 = vsub.f32 %v2332_v6, %v2340_v19 }
0x10cc   :  { %v2345_v20 = vmul.f32 %v2343_v9, %v2343_v9 }
0x10cd   :  { %v2344_v21 = vmul.f32 %v2342_v2, %v2342_v2 }
0x10ce   :  { %v2349_v42 = vsel %vm592_vm0, %v2345_v20, 0.0 }
0x10cf   :  { %2350 = vadd.xlane.f32.xlu0 %v2349_v42  ;;  %v2346_v54 = vsel %vm592_vm0, %v2344_v21, 0.0 }
0x10d0   :  { %2347 = vadd.xlane.f32.xlu1 %v2346_v54 }
0x115c   :  { %v2351_v23 = vpop.xlane.xlu0 %2350 }
0x115d   :  { %v2353_v24 = vmul.f32 0.03125, %v2351_v23  ;;  %v2348_v25 = vpop.xlane.xlu1 %2347 }
0x115e   :  { %v2352_v26 = vmul.f32 0.03125, %v2348_v25 }
0x115f   :  { %v2355_v27 = vadd.f32 1e-05, %v2353_v24 }
0x1160   :  { %v2354_v28 = vadd.f32 1e-05, %v2352_v26 }
0x1161   :  { %5250 = vrsqrt.f32 %v2355_v27 }
0x1162   :  { %5252 = vrsqrt.f32 %v2354_v28 }
0x116b   :  { %v5251_v31 = vpop.eup %5250 }
0x116c   :  { %v5253_v34 = vpop.eup %5252  ;;  %v2359_v35 = vmul.f32 %v5251_v31, %v2343_v9 }
0x116d   :  { %v2358_v36 = vmul.f32 %v5253_v34, %v2342_v2 }
0x116e   :  { %v2365_v39 = vmul.f32 %v2363_v30, %v2359_v35 }
0x116f   :  { %v2364_v40 = vmul.f32 %v2363_v30, %v2358_v36 }
0x1170   :  { %v6155_v44 = vadd.f32 %v2369_v37, %v2365_v39 }
0x1171   :  { %v6153_v43 = vadd.f32 %v2369_v37, %v2364_v40 }
0x1173   :  { %4843 = vmatprep.mubr.msk.f32.mxu0 %vm592_vm0, %v6153_v43 }
0x1174   :  { %4844 = vmatmul.mubr.msk.f32.vlgmr.msra.gmra.mrb[28].mxu0 %vm592_vm0, %v6155_v44 }
0x1175   :  { %4848 = vmatprep.mubr.msk.f32.mxu0 %vm5326_vm1, %v5325_v10 }
0x1247   :  { %v4845_v47 = vpop.f32.mrb[28].mxu0 }
0x1248   :  { %v6170_v50 = vadd.f32 %v4845_v47, %v2401_v11  ;;  %v2474_v51 = vpop.f32.mrb[29].mxu0 }
0x1249   :  { %v6172_v52 = vadd.f32 %v2474_v51, %v2401_v11 }
0x124a   :  { %2561 = vrot.lane.b32.xlu0 %v6170_v50, %s5327_s30 }
0x124b   :  { %2484 = vrot.lane.b32.xlu1 %v6172_v52, %s5327_s30 }
0x12bc   :  { %v2562_v55 = vpop.permute.xlu0 %2561 }
0x12bd   :  { %v2485_v53 = vpop.permute.xlu1 %2484 }
0x12be   :  { %4847 = vmatpush3.xpose.msk.msra.mxu0 %vm677_vm2, %v2485_v53 }
0x12bf   :  { %4851 = vmatprep.subr.mxu0 %v5325_v10 }
0x12c1   :  { %4849 = vmatmul.mubr.msk.f32.vlgmr.msra.gmra.mrb[30].mxu0 %vm677_vm2, %v6172_v52 }
0x12c2   :  { %4852 = vmatpush3.xpose.msk.msra.mxu0 %vm677_vm2, %v2562_v55  ;;  %4853 = vmatprep.mubr.msk.f32.mxu0 %vm5326_vm1, %v5325_v10 }
0x12c3   :  { %4861 = vmatprep.subr.mxu0 %v5325_v10 }
0x12c5   :  { %4854 = vmatmul.mubr.msk.f32.vlgmr.msra.gmra.mrb[32].mxu0 %vm677_vm2, %v6170_v50 }
0x12c6   :  { %4863 = vmatprep.mubr.msk.f32.mxu0 %vm5326_vm1, %v5325_v10 }
0x1394   :  { %v2556_v49 = vpop.f32.mrb[30].mxu0 }
0x1395   :  { %v2637_v56 = vmul.f32 0.35355338, %v2556_v49  ;;  %v4850_v57 = vpop.f32.mrb[31].mxu0 }
0x1397   :  { %v2639_v46 = vsel %vm677_vm2, %v2637_v56, -inf }
0x1398   :  { %2640 = vmax.xlane.f32.xlu1 %v2639_v46  ;;  %v2633_v58 = vpop.f32.mrb[32].mxu0 }
0x1399   :  { %v2638_v59 = vmul.f32 0.35355338, %v2633_v58  ;;  %v4855_v61 = vpop.f32.mrb[33].mxu0 }
0x139b   :  { %v2642_v62 = vsel %vm677_vm2, %v2638_v59, -inf }
0x139c   :  { %2643 = vmax.xlane.f32.xlu0 %v2642_v62 }
0x13a9   :  { %2661 = vrot.lane.b32.xlu1 %v6172_v52, %s5328_s11 }
0x13ad   :  { %2815 = vrot.lane.b32.xlu1 %v6172_v52, %s5329_s12 }
0x13b1   :  { %2893 = vrot.lane.b32.xlu1 %v6170_v50, %s5329_s12 }
0x13b2   :  { %2737 = vrot.lane.b32.xlu0 %v6170_v50, %s5328_s11 }
0x1425   :  { %v2641_v0 = vpop.xlane.xlu1 %2640 }
0x1426   :  { %v2645_v1 = vsub.f32 %v2637_v56, %v2641_v0 }
0x1428   :  { %v2647_v3 = vmul.f32 1.442695, %v2645_v1 }
0x1429   :  { %v2662_v5 = vpop.permute.xlu1 %2661  ;;  %v2644_v6 = vpop.xlane.xlu0 %2643 }
0x142a   :  { %5254 = vpow2.f32 %v2647_v3  ;;  %v2646_v12 = vsub.f32 %v2638_v59, %v2644_v6  ;;  %4857 = vmatpush3.msra.mxu1 %v2662_v5 }
0x142b   :  { %4866 = vmatprep.subr.mxu1 %v5325_v10 }
0x142c   :  { %v2649_v13 = vmul.f32 1.442695, %v2646_v12 }
0x142d   :  { %v2738_v14 = vpop.permute.xlu0 %2737  ;;  %v2816_v2 = vpop.permute.xlu1 %2815 }
0x142e   :  { %5256 = vpow2.f32 %v2649_v13  ;;  %4862 = vmatpush3.msra.mxu0 %v2738_v14 }
0x142f   :  { %4871 = vmatprep.subr.mxu0 %v5325_v10 }
0x1431   :  { %v2894_v20 = vpop.permute.xlu1 %2893 }
0x1434   :  { %v5255_v17 = vpop.eup %5254 }
0x1435   :  { %v2651_v18 = vsel %vm677_vm2, %v5255_v17, 0.0 }
0x1436   :  { %2652 = vadd.xlane.f32.xlu1 %v2651_v18 }
0x1438   :  { %v5257_v19 = vpop.eup %5256 }
0x1439   :  { %v2654_v9 = vsel %vm677_vm2, %v5257_v19, 0.0 }
0x143a   :  { %2655 = vadd.xlane.f32.xlu0 %v2654_v9 }
0x1447   :  { %2891 = vrot.lane.b32.xlu1 %v6170_v50, %s5330_s13 }
0x1450   :  { %2813 = vrot.lane.b32.xlu0 %v6172_v52, %s5330_s13 }
0x14c3   :  { %v2653_v21 = vpop.xlane.xlu1 %2652 }
0x14c4   :  { %5258 = vrcp.f32 %v2653_v21 }
0x14c7   :  { %v2656_v42 = vpop.xlane.xlu0 %2655  ;;  %v2892_v22 = vpop.permute.xlu1 %2891 }
0x14c8   :  { %5260 = vrcp.f32 %v2656_v42 }
0x14cb   :  { %v2814_v4 = vpop.permute.xlu0 %2813 }
0x14ce   :  { %v5259_v54 = vpop.eup %5258 }
0x14cf   :  { %v2659_v7 = vmul.f32 %v5259_v54, %v5255_v17 }
0x14d1   :  { %4859 = vmatmul.mubr.msk.f32.vlgmr.msra.gmra.mrb[28].mxu1 %vm677_vm2, %v2659_v7 }
0x14d2   :  { %v5261_v8 = vpop.eup %5260  ;;  %4867 = vmatpush3.xpose.msk.msra.mxu1 %vm677_vm2, %v2816_v2  ;;  %4868 = vmatprep.mubr.msk.f32.mxu1 %vm5326_vm1, %v5325_v10 }
0x14d3   :  { %v2660_v15 = vmul.f32 %v5261_v8, %v5257_v19  ;;  %4876 = vmatprep.subr.mxu1 %v5325_v10 }
0x14d5   :  { %4864 = vmatmul.mubr.msk.f32.vlgmr.msra.gmra.mrb[34].mxu0 %vm677_vm2, %v2660_v15  ;;  %4869 = vmatmul.mubr.msk.f32.vlgmr.msra.gmra.mrb[30].mxu1 %vm677_vm2, %v2814_v4 }
0x14d6   :  { %4872 = vmatpush3.xpose.msk.msra.mxu0 %vm677_vm2, %v2894_v20  ;;  %4873 = vmatprep.mubr.msk.f32.mxu0 %vm5326_vm1, %v5325_v10 }
0x14d7   :  { %4881 = vmatprep.subr.mxu0 %v5325_v10  ;;  %4878 = vmatprep.mubr.msk.f32.mxu1 %vm5326_vm1, %v5325_v10 }
0x14d9   :  { %4874 = vmatmul.mubr.msk.f32.vlgmr.msra.gmra.mrb[36].mxu0 %vm677_vm2, %v2892_v22 }
0x14da   :  { %4883 = vmatprep.mubr.msk.f32.mxu0 %vm5326_vm1, %v5325_v10 }
0x15a4   :  { %v6224_v63 = vpop.f32.mrb[28].mxu1 }
0x15a5   :  { %v4860_v23 = vpop.f32.mrb[29].mxu1 }
0x15a8   :  { %v6226_v24 = vpop.f32.mrb[34].mxu0  ;;  %v2887_v25 = vpop.f32.mrb[30].mxu1 }
0x15a9   :  { %v2969_v26 = vmul.f32 0.35355338, %v2887_v25  ;;  %v4865_v27 = vpop.f32.mrb[35].mxu0  ;;  %v4870_v28 = vpop.f32.mrb[31].mxu1 }
0x15ab   :  { %v2971_v30 = vsel %vm677_vm2, %v2969_v26, -inf }
0x15ac   :  { %2972 = vmax.xlane.f32.xlu0 %v2971_v30  ;;  %v2965_v31 = vpop.f32.mrb[36].mxu0 }
0x15ad   :  { %v2970_v34 = vmul.f32 0.35355338, %v2965_v31  ;;  %v4875_v35 = vpop.f32.mrb[37].mxu0 }
0x15af   :  { %v2974_v36 = vsel %vm677_vm2, %v2970_v34, -inf }
0x15b0   :  { %2975 = vmax.xlane.f32.xlu1 %v2974_v36 }
0x15c1   :  { %2993 = vrot.lane.b32.xlu1 %v6172_v52, %s5331_s14 }
0x15c2   :  { %3069 = vrot.lane.b32.xlu0 %v6170_v50, %s5331_s14 }
0x15c5   :  { %3147 = vrot.lane.b32.xlu1 %v6172_v52, %s5332_s15 }
0x15c9   :  { %3225 = vrot.lane.b32.xlu1 %v6170_v50, %s5332_s15 }
0x15cd   :  { %3223 = vrot.lane.b32.xlu1 %v6170_v50, %s5333_s16 }
0x1639   :  { %v2973_v37 = vpop.xlane.xlu0 %2972 }
0x163a   :  { %v2977_v39 = vsub.f32 %v2969_v26, %v2973_v37 }
0x163c   :  { %v2979_v40 = vmul.f32 1.442695, %v2977_v39 }
0x163d   :  { %v3070_v11 = vpop.permute.xlu0 %3069  ;;  %v2976_v47 = vpop.xlane.xlu1 %2975 }
0x163e   :  { %5262 = vpow2.f32 %v2979_v40  ;;  %v2978_v51 = vsub.f32 %v2970_v34, %v2976_v47  ;;  %4882 = vmatpush3.msra.mxu0 %v3070_v11 }
0x163f   :  { %4891 = vmatprep.subr.mxu0 %v5325_v10 }
0x1640   :  { %v2981_v53 = vmul.f32 1.442695, %v2978_v51 }
0x1641   :  { %v2994_v55 = vpop.permute.xlu1 %2993 }
0x1642   :  { %5264 = vpow2.f32 %v2981_v53  ;;  %4877 = vmatpush3.msra.mxu1 %v2994_v55 }
0x1643   :  { %4886 = vmatprep.subr.mxu1 %v5325_v10 }
0x1645   :  { %v3148_v61 = vpop.permute.xlu1 %3147 }
0x1648   :  { %v5263_v49 = vpop.eup %5262 }
0x1649   :  { %v2983_v56 = vsel %vm677_vm2, %v5263_v49, 0.0  ;;  %v3226_v3 = vpop.permute.xlu1 %3225 }
0x164a   :  { %2984 = vadd.xlane.f32.xlu0 %v2983_v56 }
0x164c   :  { %v5265_v57 = vpop.eup %5264 }
0x164d   :  { %v2986_v46 = vsel %vm677_vm2, %v5265_v57, 0.0  ;;  %v3224_v12 = vpop.permute.xlu1 %3223 }
0x164e   :  { %2987 = vadd.xlane.f32.xlu0 %v2986_v46 }
0x1664   :  { %3145 = vrot.lane.b32.xlu0 %v6172_v52, %s5333_s16 }
0x16d7   :  { %v2985_v58 = vpop.xlane.xlu0 %2984 }
0x16d8   :  { %5266 = vrcp.f32 %v2985_v58 }
0x16db   :  { %v2988_v59 = vpop.xlane.xlu0 %2987 }
0x16dc   :  { %5268 = vrcp.f32 %v2988_v59 }
0x16df   :  { %v3146_v6 = vpop.permute.xlu0 %3145 }
0x16e2   :  { %v5267_v62 = vpop.eup %5266 }
0x16e3   :  { %v2991_v0 = vmul.f32 %v5267_v62, %v5263_v49 }
0x16e5   :  { %4879 = vmatmul.mubr.msk.f32.vlgmr.msra.gmra.mrb[32].mxu1 %vm677_vm2, %v2991_v0 }
0x16e6   :  { %v5269_v1 = vpop.eup %5268  ;;  %4887 = vmatpush3.xpose.msk.msra.mxu1 %vm677_vm2, %v3148_v61  ;;  %4888 = vmatprep.mubr.msk.f32.mxu1 %vm5326_vm1, %v5325_v10 }
0x16e7   :  { %v2992_v5 = vmul.f32 %v5269_v1, %v5265_v57  ;;  %4896 = vmatprep.subr.mxu1 %v5325_v10 }
0x16e9   :  { %4884 = vmatmul.mubr.msk.f32.vlgmr.msra.gmra.mrb[38].mxu0 %vm677_vm2, %v2992_v5  ;;  %4889 = vmatmul.mubr.msk.f32.vlgmr.msra.gmra.mrb[34].mxu1 %vm677_vm2, %v3146_v6 }
0x16ea   :  { %4892 = vmatpush3.xpose.msk.msra.mxu0 %vm677_vm2, %v3226_v3  ;;  %4893 = vmatprep.mubr.msk.f32.mxu0 %vm5326_vm1, %v5325_v10 }
0x16eb   :  { %4901 = vmatprep.subr.mxu0 %v5325_v10  ;;  %4898 = vmatprep.mubr.msk.f32.mxu1 %vm5326_vm1, %v5325_v10 }
0x16ed   :  { %4894 = vmatmul.mubr.msk.f32.vlgmr.msra.gmra.mrb[40].mxu0 %vm677_vm2, %v3224_v12 }
0x16ee   :  { %4903 = vmatprep.mubr.msk.f32.mxu0 %vm5326_vm1, %v5325_v10 }
0x17b8   :  { %v6262_v13 = vpop.f32.mrb[32].mxu1 }
0x17b9   :  { %v4880_v14 = vpop.f32.mrb[33].mxu1 }
0x17bc   :  { %v6264_v17 = vpop.f32.mrb[38].mxu0  ;;  %v3219_v18 = vpop.f32.mrb[34].mxu1 }
0x17bd   :  { %v3301_v19 = vmul.f32 0.35355338, %v3219_v18  ;;  %v4885_v9 = vpop.f32.mrb[39].mxu0  ;;  %v4890_v2 = vpop.f32.mrb[35].mxu1 }
0x17bf   :  { %v3303_v20 = vsel %vm677_vm2, %v3301_v19, -inf }
0x17c0   :  { %3304 = vmax.xlane.f32.xlu0 %v3303_v20  ;;  %v3297_v21 = vpop.f32.mrb[40].mxu0 }
0x17c1   :  { %v3302_v42 = vmul.f32 0.35355338, %v3297_v21  ;;  %v4895_v54 = vpop.f32.mrb[41].mxu0 }
0x17c3   :  { %v3306_v7 = vsel %vm677_vm2, %v3302_v42, -inf }
0x17c4   :  { %3307 = vmax.xlane.f32.xlu1 %v3306_v7 }
0x17d5   :  { %3325 = vrot.lane.b32.xlu1 %v6172_v52, %s5334_s17 }
0x17d6   :  { %3401 = vrot.lane.b32.xlu0 %v6170_v50, %s5334_s17  ;;  %s6459_s17 = smov 24  }
0x17d9   :  { %3479 = vrot.lane.b32.xlu1 %v6172_v52, %s5335_s18 }
0x17dd   :  { %3557 = vrot.lane.b32.xlu1 %v6170_v50, %s5335_s18 }
0x17e1   :  { %3555 = vrot.lane.b32.xlu1 %v6170_v50, %s5336_s19 }
0x184d   :  { %v3305_v8 = vpop.xlane.xlu0 %3304 }
0x184e   :  { %v3309_v15 = vsub.f32 %v3301_v19, %v3305_v8 }
0x1850   :  { %v3311_v4 = vmul.f32 1.442695, %v3309_v15 }
0x1851   :  { %v3402_v22 = vpop.permute.xlu0 %3401  ;;  %v3308_v23 = vpop.xlane.xlu1 %3307 }
0x1852   :  { %5270 = vpow2.f32 %v3311_v4  ;;  %v3310_v25 = vsub.f32 %v3302_v42, %v3308_v23  ;;  %4902 = vmatpush3.msra.mxu0 %v3402_v22  ;;  %v4376_v22 = vld [vmem:[%s6450_s4 + $0x28] sm:$0xff] }
0x1853   :  { %4911 = vmatprep.subr.mxu0 %v5325_v10 }
0x1854   :  { %v3313_v26 = vmul.f32 1.442695, %v3310_v25  ;;  %v4377_v25 = vld [vmem:[%s6450_s4 + $0x30] sm:$0xff] }
0x1855   :  { %v3326_v27 = vpop.permute.xlu1 %3325 }
0x1856   :  { %5272 = vpow2.f32 %v3313_v26  ;;  %4897 = vmatpush3.msra.mxu1 %v3326_v27  ;;  %v4378_v26 = vld [vmem:[%s6450_s4 + $0x38] sm:$0xff] }
0x1857   :  { %4906 = vmatprep.subr.mxu1 %v5325_v10  ;;  %v5158_v27 = vpack.c.bf16 %v4378_v26, %v4377_v25 }
0x1859   :  { %v3480_v37 = vpop.permute.xlu1 %3479 }
0x185c   :  { %v5271_v28 = vpop.eup %5270 }
0x185d   :  { %v3315_v30 = vsel %vm677_vm2, %v5271_v28, 0.0  ;;  %v3558_v47 = vpop.permute.xlu1 %3557 }
0x185e   :  { %3316 = vadd.xlane.f32.xlu0 %v3315_v30 }
0x1860   :  { %v5273_v31 = vpop.eup %5272 }
0x1861   :  { %v3318_v34 = vsel %vm677_vm2, %v5273_v31, 0.0  ;;  %v3556_v55 = vpop.permute.xlu1 %3555 }
0x1862   :  { %3319 = vadd.xlane.f32.xlu0 %v3318_v34 }
0x1878   :  { %3477 = vrot.lane.b32.xlu0 %v6172_v52, %s5336_s19 }
0x18eb   :  { %v3317_v35 = vpop.xlane.xlu0 %3316 }
0x18ec   :  { %5274 = vrcp.f32 %v3317_v35 }
0x18ef   :  { %v3320_v36 = vpop.xlane.xlu0 %3319 }
0x18f0   :  { %5276 = vrcp.f32 %v3320_v36 }
0x18f3   :  { %v3478_v53 = vpop.permute.xlu0 %3477 }
0x18f6   :  { %v5275_v39 = vpop.eup %5274 }
0x18f7   :  { %v3323_v40 = vmul.f32 %v5275_v39, %v5271_v28 }
0x18f9   :  { %4899 = vmatmul.mubr.msk.f32.vlgmr.msra.gmra.mrb[36].mxu1 %vm677_vm2, %v3323_v40 }
0x18fa   :  { %v5277_v11 = vpop.eup %5276  ;;  %4907 = vmatpush3.xpose.msk.msra.mxu1 %vm677_vm2, %v3480_v37  ;;  %4908 = vmatprep.mubr.msk.f32.mxu1 %vm5326_vm1, %v5325_v10 }
0x18fb   :  { %v3324_v51 = vmul.f32 %v5277_v11, %v5273_v31  ;;  %4916 = vmatprep.subr.mxu1 %v5325_v10 }
0x18fd   :  { %4904 = vmatmul.mubr.msk.f32.vlgmr.msra.gmra.mrb[42].mxu0 %vm677_vm2, %v3324_v51  ;;  %4909 = vmatmul.mubr.msk.f32.vlgmr.msra.gmra.mrb[38].mxu1 %vm677_vm2, %v3478_v53 }
0x18fe   :  { %4912 = vmatpush3.xpose.msk.msra.mxu0 %vm677_vm2, %v3558_v47  ;;  %4913 = vmatprep.mubr.msk.f32.mxu0 %vm5326_vm1, %v5325_v10 }
0x18ff   :  { %4921 = vmatprep.subr.mxu0 %v5325_v10  ;;  %4918 = vmatprep.mubr.msk.f32.mxu1 %vm5326_vm1, %v5325_v10 }
0x1901   :  { %4914 = vmatmul.mubr.msk.f32.vlgmr.msra.gmra.mrb[44].mxu0 %vm677_vm2, %v3556_v55 }
0x1902   :  { %4923 = vmatprep.mubr.msk.f32.mxu0 %vm5326_vm1, %v5325_v10 }
0x19cc   :  { %v3397_v49 = vpop.f32.mrb[36].mxu1 }
0x19cd   :  { %v4900_v56 = vpop.f32.mrb[37].mxu1 }
0x19d0   :  { %v3473_v57 = vpop.f32.mrb[42].mxu0  ;;  %v3551_v46 = vpop.f32.mrb[38].mxu1 }
0x19d1   :  { %v3633_v58 = vmul.f32 0.35355338, %v3551_v46  ;;  %v4905_v59 = vpop.f32.mrb[43].mxu0  ;;  %v4910_v61 = vpop.f32.mrb[39].mxu1 }
0x19d3   :  { %v3635_v62 = vsel %vm677_vm2, %v3633_v58, -inf }
0x19d4   :  { %3636 = vmax.xlane.f32.xlu0 %v3635_v62  ;;  %v3629_v0 = vpop.f32.mrb[44].mxu0 }
0x19d5   :  { %v3634_v1 = vmul.f32 0.35355338, %v3629_v0  ;;  %v4915_v3 = vpop.f32.mrb[45].mxu0 }
0x19d7   :  { %v3638_v5 = vsel %vm677_vm2, %v3634_v1, -inf }
0x19d8   :  { %3639 = vmax.xlane.f32.xlu1 %v3638_v5 }
0x19e9   :  { %3657 = vrot.lane.b32.xlu1 %v6172_v52, %s5337_s20 }
0x19ed   :  { %3811 = vrot.lane.b32.xlu1 %v6262_v13, %s5338_s1 }
0x19f1   :  { %3813 = vrot.lane.b32.xlu1 %v6264_v17, %s5338_s1 }
0x19f5   :  { %3821 = vrot.lane.b32.xlu1 %v3473_v57, %s5339_s21 }
0x1a61   :  { %v3637_v6 = vpop.xlane.xlu0 %3636 }
0x1a62   :  { %v3641_v12 = vsub.f32 %v3633_v58, %v3637_v6 }
0x1a64   :  { %v3643_v14 = vmul.f32 1.442695, %v3641_v12 }
0x1a65   :  { %v3640_v18 = vpop.xlane.xlu1 %3639 }
0x1a66   :  { %5278 = vpow2.f32 %v3643_v14  ;;  %v3642_v19 = vsub.f32 %v3634_v1, %v3640_v18 }
0x1a68   :  { %v3645_v9 = vmul.f32 1.442695, %v3642_v19 }
0x1a69   :  { %v3658_v2 = vpop.permute.xlu1 %3657 }
0x1a6a   :  { %5280 = vpow2.f32 %v3645_v9  ;;  %4917 = vmatpush3.msra.mxu1 %v3658_v2  ;;  %v4380_v9 = vld [vmem:[%s6451_s5 + $0x28] sm:$0xff] }
0x1a6d   :  { %v3812_v35 = vpop.permute.xlu1 %3811 }
0x1a6e   :  { %v3833_v39 = vsel %vm677_vm2, %v6224_v63, %v3812_v35  ;;  %v3842_v63 = vrot.slane %v6166_v45, %v2035_v48  ;;  %v3961_v35 = vrot.slane %v6166_v45, %v2155_v33  ;;  %v4390_v33 = vld [vmem:[%s6452_s6 + $0x78] sm:$0xff] }
0x1a70   :  { %v5279_v20 = vpop.eup %5278 }
0x1a71   :  { %v3647_v52 = vsel %vm677_vm2, %v5279_v20, 0.0  ;;  %v3814_v36 = vpop.permute.xlu1 %3813 }
0x1a72   :  { %3648 = vadd.xlane.f32.xlu0 %v3647_v52  ;;  %v3834_v53 = vsel %vm677_vm2, %v6226_v24, %v3814_v36  ;;  %v4382_v52 = vld [vmem:[%s6451_s5 + $0x38] sm:$0xff] }
0x1a74   :  { %v5281_v13 = vpop.eup %5280 }
0x1a75   :  { %v3650_v21 = vsel %vm677_vm2, %v5281_v13, 0.0  ;;  %v3822_v40 = vpop.permute.xlu1 %3821 }
0x1a76   :  { %3651 = vadd.xlane.f32.xlu0 %v3650_v21  ;;  %v3836_v55 = vsel %vm2027_vm3, %v3834_v53, %v3822_v40  ;;  %v4383_v21 = vld [vmem:[%s6452_s6 + $0x40] sm:$0xff]  ;;  %v3967_v53 = vrot.slane %v6166_v45, %v2161_v41 }
0x1a8c   :  { %3733 = vrot.lane.b32.xlu0 %v6170_v50, %s5337_s20  ;;  %v4375_v50 = vld [vmem:[%s6450_s4 + $0x20] sm:$0xff] }
0x1a8d   :  { %v5154_v23 = vpack.c.bf16 %v4376_v22, %v4375_v50 }
0x1a8f   :  { %5155 = vmatprep.subr.bf16.mxu1 %v5154_v23 }
0x1a90   :  { %3819 = vrot.lane.b32.xlu0 %v3397_v49, %s5339_s21  ;;  %s5342_s21 = smov [#allocation2]  }
0x1a91   :  { %s4298_s24 = sshll.u32 %s5342_s21, 4  ;;  %s4299_s24 = int_to_ptr.vmem [resolvable:$true] %s4298_s24 }
0x1a92   :  { %p5303_p1 = scmp.lt.s32.totalorder %s4299_s24, %s4299_s24 }
0x1aff   :  { %v3649_v17 = vpop.xlane.xlu0 %3648 }
0x1b00   :  { %5282 = vrcp.f32 %v3649_v17  ;;  %v4384_v17 = vld [vmem:[%s6452_s6 + $0x48] sm:$0xff] }
0x1b03   :  { %v3652_v42 = vpop.xlane.xlu0 %3651 }
0x1b04   :  { %5284 = vrcp.f32 %v3652_v42  ;;  %v4385_v42 = vld [vmem:[%s6452_s6 + $0x50] sm:$0xff] }
0x1b07   :  { %v3734_v54 = vpop.permute.xlu0 %3733 }
0x1b08   :  { %4922 = vmatpush3.msra.mxu0 %v3734_v54  ;;  %v5170_v54 = vpack.c.bf16 %v4384_v17, %v4383_v21 }
0x1b0a   :  { %v5283_v7 = vpop.eup %5282 }
0x1b0b   :  { %v3655_v8 = vmul.f32 %v5283_v7, %v5279_v20  ;;  %v3820_v37 = vpop.permute.xlu0 %3819  ;;  %v4381_v20 = vld [vmem:[%s6451_s5 + $0x30] sm:$0xff]  ;;  %v4386_v7 = vld [vmem:[%s6452_s6 + $0x58] sm:$0xff] }
0x1b0c   :  { %v3835_v11 = vsel %vm2027_vm3, %v3833_v39, %v3820_v37 }
0x1b0d   :  { %4919 = vmatmul.mubr.msk.f32.vlgmr.msra.gmra.mrb[40].mxu1 %vm677_vm2, %v3655_v8  ;;  %v5174_v8 = vpack.c.bf16 %v4386_v7, %v4385_v42 }
0x1b0e   :  { %v5285_v15 = vpop.eup %5284  ;;  %5157 = vmatpush3.bf16.msra.mxu1 %v5154_v23 }
0x1b0f   :  { %v3656_v4 = vmul.f32 %v5285_v15, %v5281_v13  ;;  %5159 = vmatprep.subr.bf16.mxu1 %v5158_v27  ;;  %v5166_v13 = vpack.c.bf16 %v4382_v52, %v4381_v20  ;;  %v4387_v15 = vld [vmem:[%s6452_s6 + $0x60] sm:$0xff]  ;;  %v5341_v20 = vmov 0.0|0.0  }
0x1b11   :  { %4924 = vmatmul.mubr.msk.f32.vlgmr.msra.gmra.mrb[46].mxu0 %vm677_vm2, %v3656_v4  ;;  %v4388_v4 = vld [vmem:[%s6452_s6 + $0x68] sm:$0xff] }
0x1b12   :  { %5161 = vmatpush3.bf16.msra.mxu1 %v5158_v27  ;;  %v5178_v50 = vpack.c.bf16 %v4388_v4, %v4387_v15  ;;  %v4167_v4 = vrot.slane %v6166_v45, %v2362_v29 }
0x1b13   :  { %5171 = vmatprep.subr.bf16.mxu1 %v5170_v54 }
0x1be0   :  { %v3729_v28 = vpop.f32.mrb[40].mxu1 }
0x1be1   :  { %3827 = vrot.lane.b32.xlu0 %v3729_v28, %s6459_s17  ;;  %v4920_v30 = vpop.f32.mrb[41].mxu1 }
0x1be2   :  { %v3955_v30 = vrot.slane %v6166_v45, %v2149_v32  ;;  %v4389_v32 = vld [vmem:[%s6452_s6 + $0x70] sm:$0xff] }
0x1be4   :  { %v3805_v31 = vpop.f32.mrb[46].mxu0 }
0x1be5   :  { %3829 = vrot.lane.b32.xlu1 %v3805_v31, %s6459_s17  ;;  %v4925_v34 = vpop.f32.mrb[47].mxu0 }
0x1c53   :  { %v3828_v47 = vpop.permute.xlu0 %3827 }
0x1c54   :  { %v3837_v51 = vsel %vm2030_vm4, %v3835_v11, %v3828_v47 }
0x1c55   :  { %4934 = vmatprep.mubr.msk.f32.mxu1 %vm592_vm0, %v3837_v51  ;;  %v5182_v51 = vpack.c.bf16 %v4390_v33, %v4389_v32 }
0x1c57   :  { %v3830_v49 = vpop.permute.xlu1 %3829 }
0x1c58   :  { %v3838_v56 = vsel %vm2030_vm4, %v3836_v55, %v3830_v49 }
0x1c59   :  { %4935 = vmatmul.mubr.msk.f32.vlgmr.msra.gmra.mrb[42].mxu1 %vm592_vm0, %v3838_v56 }
0x1c5a   :  { %5173 = vmatpush3.bf16.msra.mxu1 %v5170_v54 }
0x1c5b   :  { %5175 = vmatprep.subr.bf16.mxu1 %v5174_v8 }
0x1c5e   :  { %5177 = vmatpush3.bf16.msra.mxu1 %v5174_v8 }
0x1c5f   :  { %5179 = vmatprep.subr.bf16.mxu1 %v5178_v50 }
0x1c62   :  { %5181 = vmatpush3.bf16.msra.mxu1 %v5178_v50 }
0x1c63   :  { %5183 = vmatprep.subr.bf16.mxu1 %v5182_v51 }
0x1c66   :  { %5185 = vmatpush3.bf16.msra.mxu1 %v5182_v51 }
0x1d2c   :  { %v4936_v57 = vpop.f32.mrb[42].mxu1 }
0x1d2d   :  { %v3921_v46 = vadd.f32 %v4936_v57, %v3842_v63  ;;  %v3915_v58 = vpop.f32.mrb[43].mxu1 }
0x1d2e   :  { %v3916_v59 = vadd.f32 %v3915_v58, %v3842_v63 }
0x1d2f   :  { %v3925_v61 = vadd.f32 %v3921_v46, %v6155_v44  ;;  %v4054_v46 = vrot.slane %v6166_v45, %v2248_v60 }
0x1d30   :  { %v3924_v62 = vadd.f32 %v3916_v59, %v6153_v43  ;;  %v4379_v43 = vld [vmem:[%s6451_s5 + $0x20] sm:$0xff] }
0x1d31   :  { %v3929_v24 = vsel %vm592_vm0, %v3925_v61, 0.0  ;;  %v5162_v2 = vpack.c.bf16 %v4380_v9, %v4379_v43  ;;  %v4176_v43 = vld [vmem:[%s6454_s8] sm:$0xff]  ;;  %v4177_v9 = vld [vmem:[%s6454_s8 + $0x8] sm:$0xff] }
0x1d32   :  { %3930 = vadd.xlane.f32.xlu1 %v3929_v24  ;;  %v3926_v0 = vsel %vm592_vm0, %v3924_v62, 0.0  ;;  %v5187_v52 = vpack.c.bf16 %v4177_v9, %v4176_v43 }
0x1d33   :  { %3927 = vadd.xlane.f32.xlu0 %v3926_v0  ;;  %5163 = vmatprep.subr.bf16.mxu0 %v5162_v2 }
0x1d34   :  { %5165 = vmatpush3.bf16.msra.mxu0 %v5162_v2  ;;  %v4178_v2 = vld [vmem:[%s6454_s8 + $0x10] sm:$0xff] }
0x1d35   :  { %5167 = vmatprep.subr.bf16.mxu0 %v5166_v13 }
0x1d38   :  { %5169 = vmatpush3.bf16.msra.mxu0 %v5166_v13  ;;  %v4179_v13 = vld [vmem:[%s6454_s8 + $0x18] sm:$0xff] }
0x1d39   :  { %5186 = vmatprep.subr.bf16.mxu0 %v5341_v20  ;;  %v5190_v21 = vpack.c.bf16 %v4179_v13, %v4178_v2 }
0x1dbf   :  { %v3931_v1 = vpop.xlane.xlu1 %3930 }
0x1dc0   :  { %v3933_v3 = vmul.f32 0.03125, %v3931_v1  ;;  %v3928_v5 = vpop.xlane.xlu0 %3927 }
0x1dc1   :  { %v3932_v6 = vmul.f32 0.03125, %v3928_v5 }
0x1dc2   :  { %v3935_v12 = vsub.f32 %v3925_v61, %v3933_v3 }
0x1dc3   :  { %v3934_v48 = vsub.f32 %v3924_v62, %v3932_v6 }
0x1dc4   :  { %v3937_v19 = vmul.f32 %v3935_v12, %v3935_v12 }
0x1dc5   :  { %v3936_v14 = vmul.f32 %v3934_v48, %v3934_v48 }
0x1dc6   :  { %v3941_v44 = vsel %vm592_vm0, %v3937_v19, 0.0 }
0x1dc7   :  { %v3938_v18 = vsel %vm592_vm0, %v3936_v14, 0.0 }
0x1dc8   :  { %3939 = vadd.xlane.f32.xlu0 %v3938_v18 }
0x1dcc   :  { %3942 = vadd.xlane.f32.xlu0 %v3941_v44 }
0x1e55   :  { %v3940_v22 = vpop.xlane.xlu0 %3939 }
0x1e56   :  { %v3944_v23 = vmul.f32 0.03125, %v3940_v22 }
0x1e58   :  { %v3946_v25 = vadd.f32 1e-05, %v3944_v23  ;;  %v4173_v23 = vrot.slane %v6166_v45, %v2368_v16 }
0x1e59   :  { %v3943_v26 = vpop.xlane.xlu0 %3942 }
0x1e5a   :  { %5286 = vrsqrt.f32 %v3946_v25  ;;  %v3945_v27 = vmul.f32 0.03125, %v3943_v26 }
0x1e5c   :  { %v3947_v28 = vadd.f32 1e-05, %v3945_v27 }
0x1e5e   :  { %5288 = vrsqrt.f32 %v3947_v28 }
0x1e64   :  { %v5287_v31 = vpop.eup %5286 }
0x1e65   :  { %v3950_v34 = vmul.f32 %v5287_v31, %v3934_v48 }
0x1e67   :  { %v3956_v36 = vmul.f32 %v3955_v30, %v3950_v34 }
0x1e68   :  { %v5289_v37 = vpop.eup %5288 }
0x1e69   :  { %v3951_v39 = vmul.f32 %v5289_v37, %v3935_v12  ;;  %v3962_v40 = vadd.f32 %v3961_v35, %v3956_v36 }
0x1e6b   :  { %v3957_v11 = vmul.f32 %v3955_v30, %v3951_v39  ;;  %4945 = vmatprep.mubr.msk.f32.mxu0 %vm592_vm0, %v3962_v40 }
0x1e6d   :  { %v3963_v47 = vadd.f32 %v3961_v35, %v3957_v11 }
0x1e6f   :  { %4946 = vmatmul.mubr.msk.f32.vlgmr.msra.gmra.mrb[48].mxu0 %vm592_vm0, %v3963_v47 }
0x1e70   :  { %4975 = vmatprep.mubr.msk.f32.mxu0 %vm5326_vm1, %v5325_v10  ;;  %5188 = vmatpush3.bf16.msra.mxu0 %v5187_v52 }
0x1e71   :  { %5189 = vmatprep.subr.bf16.mxu0 %v5341_v20 }
0x1e74   :  { %5191 = vmatpush3.bf16.msra.mxu0 %v5190_v21 }
0x1f42   :  { %v4947_v55 = vpop.f32.mrb[48].mxu0 }
0x1f43   :  { %v4046_v49 = vadd.f32 %v4947_v55, %v3967_v53  ;;  %v4040_v56 = vpop.f32.mrb[49].mxu0 }
0x1f44   :  { %v4041_v63 = vadd.f32 %v4040_v56, %v3967_v53 }
0x1f45   :  { %v4050_v57 = vmax.f32 %v4046_v49, 0.0  ;;  %v4424_v49 = vld [vmem:[%s6455_s9] ss:$0 sm:$0xff]  ;;  %s5298_s9 = scalar_lea.vmem %s4299_s24, 32 }
0x1f46   :  { %v4049_v10 = vmax.f32 %v4041_v63, 0.0  ;;  %p5299_p0 = scmp.ne.s32.totalorder %s4299_s24, %s5298_s9  ;;  %p5304_p2 = scmp.lt.s32.totalorder %s5298_s9, %s5298_s9 }
0x1f48   :  { %4964 = vmatprep.mubr.msk.f32.mxu1 %vm2250_vm5, %v4049_v10  ;;  %p5305_p3 = por %p5304_p2, %p5303_p1 }
0x1f49   :  { %4965 = vmatmul.mubr.msk.f32.vlgmr.msra.gmra.mrb[44].mxu1 %vm2250_vm5, %v4050_v57 }
0x1f4a   :  { %p5306_p4 = pnand %p5305_p3, %p5299_p0 }
0x201c   :  { %v4966_v58 = vpop.f32.mrb[44].mxu1 }
0x201d   :  { %v4133_v59 = vadd.f32 %v4966_v58, %v4054_v46  ;;  %v4127_v61 = vpop.f32.mrb[45].mxu1 }
0x201e   :  { %v4128_v62 = vadd.f32 %v4127_v61, %v4054_v46 }
0x201f   :  { %v4137_v24 = vadd.f32 %v4133_v59, %v3963_v47 }
0x2020   :  { %v4136_v41 = vadd.f32 %v4128_v62, %v3962_v40 }
0x2021   :  { %v4141_v0 = vsel %vm592_vm0, %v4137_v24, 0.0 }
0x2022   :  { %4142 = vadd.xlane.f32.xlu0 %v4141_v0  ;;  %v4138_v1 = vsel %vm592_vm0, %v4136_v41, 0.0 }
0x2023   :  { %4139 = vadd.xlane.f32.xlu1 %v4138_v1 }
0x20af   :  { %v4143_v3 = vpop.xlane.xlu0 %4142 }
0x20b0   :  { %v4145_v5 = vmul.f32 0.03125, %v4143_v3  ;;  %v4140_v6 = vpop.xlane.xlu1 %4139 }
0x20b1   :  { %v4144_v12 = vmul.f32 0.03125, %v4140_v6 }
0x20b2   :  { %v4147_v48 = vsub.f32 %v4137_v24, %v4145_v5 }
0x20b3   :  { %v4146_v14 = vsub.f32 %v4136_v41, %v4144_v12 }
0x20b4   :  { %v4149_v18 = vmul.f32 %v4147_v48, %v4147_v48 }
0x20b5   :  { %v4148_v60 = vmul.f32 %v4146_v14, %v4146_v14 }
0x20b6   :  { %v4153_v19 = vsel %vm592_vm0, %v4149_v18, 0.0 }
0x20b7   :  { %4154 = vadd.xlane.f32.xlu0 %v4153_v19  ;;  %v4150_v44 = vsel %vm592_vm0, %v4148_v60, 0.0 }
0x20b8   :  { %4151 = vadd.xlane.f32.xlu1 %v4150_v44 }
0x2144   :  { %v4155_v17 = vpop.xlane.xlu0 %4154 }
0x2145   :  { %v4157_v42 = vmul.f32 0.03125, %v4155_v17  ;;  %v4152_v54 = vpop.xlane.xlu1 %4151 }
0x2146   :  { %v4156_v7 = vmul.f32 0.03125, %v4152_v54 }
0x2147   :  { %v4159_v8 = vadd.f32 1e-05, %v4157_v42 }
0x2148   :  { %v4158_v15 = vadd.f32 1e-05, %v4156_v7 }
0x2149   :  { %5290 = vrsqrt.f32 %v4159_v8 }
0x214a   :  { %5292 = vrsqrt.f32 %v4158_v15 }
0x2153   :  { %v5291_v50 = vpop.eup %5290 }
0x2154   :  { %v5293_v22 = vpop.eup %5292  ;;  %v4163_v25 = vmul.f32 %v5291_v50, %v4147_v48 }
0x2155   :  { %v4162_v26 = vmul.f32 %v5293_v22, %v4146_v14 }
0x2156   :  { %v4169_v27 = vmul.f32 %v4167_v4, %v4163_v25 }
0x2157   :  { %v4168_v28 = vmul.f32 %v4167_v4, %v4162_v26 }
0x2158   :  { %v4175_v30 = vadd.f32 %v4173_v23, %v4169_v27 }
0x2159   :  { %v4174_v31 = vadd.f32 %v4173_v23, %v4168_v28 }
0x215a   :  { %v4188_v34 = vsel %vm592_vm0, %v4175_v30, 0.0 }
0x215b   :  { %v4181_v35 = vsel %vm592_vm0, %v4174_v31, 0.0  ;;  %v4189_v36 = vrot.slane %v4188_v34, 4 }
0x215c   :  { %v4182_v37 = vrot.slane %v4181_v35, 4 }
0x215d   :  { %v4190_v39 = vadd.f32 %v4189_v36, %v4188_v34 }
0x215e   :  { %v4183_v29 = vadd.f32 %v4182_v37, %v4181_v35 }
0x215f   :  { %v4191_v40 = vrot.slane %v4190_v39, 2 }
0x2160   :  { %v4184_v11 = vrot.slane %v4183_v29, 2 }
0x2161   :  { %v4192_v47 = vadd.f32 %v4191_v40, %v4190_v39 }
0x2162   :  { %v4185_v38 = vadd.f32 %v4184_v11, %v4183_v29 }
0x2163   :  { %v4193_v32 = vrot.slane %v4192_v47, 1 }
0x2164   :  { %v4186_v16 = vrot.slane %v4185_v38, 1 }
0x2165   :  { %v4194_v45 = vadd.f32 %v4193_v32, %v4192_v47 }
0x2166   :  { %v4187_v33 = vadd.f32 %v4186_v16, %v4185_v38 }
0x2167   :  { %v4196_v51 = vmul.f32 0.125, %v4194_v45 }
0x2168   :  { %v4195_v53 = vmul.f32 0.125, %v4187_v33 }
0x216a   :  { %v4206_v55 = vsel %vm4205_vm6, %v4196_v51, %v4195_v53 }
0x216b   :  { %4976 = vmatmul.mubr.msk.f32.vlgmr.msra.gmra.mrb[50].mxu0 %vm592_vm0, %v4206_v55 }
0x223e   :  { %v4275_v56 = vpop.f32.mrb[50].mxu0 }
0x223f   :  { %v4276_v63 = vadd.f32 %v4424_v49, %v4275_v56  ;;  %v4977_v10 = vpop.f32.mrb[51].mxu0 }
0x2241   :  { %v4280_v57 = vsel %vm4279_vm7, %v4276_v63, -inf }
0x2242   :  { %4281 = vmax.xlane.f32.xlu1 %v4280_v57 }
0x22cf   :  { %v4282_v46 = vpop.xlane.xlu1 %4281 }
0x22d0   :  { %v4283_v58 = vsub.f32 %v4276_v63, %v4282_v46 }
0x22d2   :  { %v4284_v59 = vmul.f32 1.442695, %v4283_v58 }
0x22d4   :  { %5294 = vpow2.f32 %v4284_v59 }
0x22de   :  { %v5295_v61 = vpop.eup %5294 }
0x22df   :  { %v4286_v62 = vsel %vm4279_vm7, %v5295_v61, 0.0 }
0x22e0   :  { %4287 = vadd.xlane.f32.xlu0 %v4286_v62 }
0x236d   :  { %v4288_v24 = vpop.xlane.xlu0 %4287 }
0x236e   :  { %5296 = vrcp.f32 %v4288_v24 }
0x2378   :  { %v5297_v41 = vpop.eup %5296 }
0x2379   :  { %v4290_v0 = vmul.f32 %v5297_v41, %v5295_v61 }
0x237b   :  { %4291 = vst.msk [vmem:[#allocation2] sm:$0x3] %vm4279_vm7, %v4290_v0 }
0x237c   :  { %5309 = shalt.err (!%p5306_p4)
}
0x237d   :  { %s5310_s0 = scalar_lea.hbm %s6456_s10, 32 }
0x237e   :  { %p5311_p5 = scmp.ne.s32.totalorder %s6456_s10, %s5310_s0  ;;  %p5314_p6 = scmp.lt.u32.totalorder %s5310_s0, %s6456_s10 }
0x2380   :  { %p5316_p7 = pnand %p5314_p6, %p5311_p5 }
0x2382   :  { %5319 = shalt.err (!%p5316_p7)
}
0x2383   :  { %4301 = dma.vmem_to_hbm [thread:$0]  %s4299_s24, 32, %s6456_s10, [#allocation3]  }
0x2384   :  { %5320 = dma.done.wait [#allocation3], 32  }
0x2385   :  { %5321 = vsyncadd [#allocation3], 4294967264 }
0x2386   :  { %4305 = vsyncpa [#allocation3], 1 }

</bundles_post_ra>
